<compile_context>
chip_gen: v7x
topology: tpu7x:2x2x1
jax: 0.10.0
libtpu: 0.0.40
codegen_flags: <defaults>
</compile_context>

<pallas_src>
import functools

import jax
import jax.numpy as jnp
import numpy as np
from jax.experimental import pallas as pl
from jax.experimental.pallas import tpu as pltpu

LANE = 128
SUB = 8


def _round_up(n, m):
    return ((n + m - 1) // m) * m


def _pad2(a, rows, cols):
    return jnp.pad(a, ((0, rows - a.shape[0]), (0, cols - a.shape[1])))


# ---------------------------------------------------------------------------
# Exact (erf-based) GELU matching torch.nn.GELU() default.
# erf via Abramowitz & Stegun 7.1.26 (|err| < 1.5e-7); the divide runs on the
# EUP via pl.reciprocal(approx=True).
# ---------------------------------------------------------------------------
def _gelu_kernel(x):
    a1, a2, a3, a4, a5 = 0.254829592, -0.284496736, 1.421413741, -1.453152027, 1.061405429
    p = 0.3275911
    xs = x * 0.7071067811865476
    ax = jnp.abs(xs)
    t = pl.reciprocal(1.0 + p * ax, approx=True)          # EUP slot, not VPU
    poly = (((((a5 * t + a4) * t) + a3) * t + a2) * t + a1) * t
    erf = 1.0 - poly * jnp.exp(-ax * ax)
    erf = jnp.where(xs < 0, -erf, erf)
    return 0.5 * x * (1.0 + erf)


# ---------------------------------------------------------------------------
# The fused kernel.
# ---------------------------------------------------------------------------
def _fused_vae_kernel(x_ref, dft_ref,
                      ew1_ref, eb1_ref, ew2_ref, eb2_ref,
                      sels_ref, eps_ref,
                      dw1_ref, db1_ref, dw2_ref, db2_ref,
                      idft_ref,
                      dec_ref, sample_ref, kl_ref,
                      *, enc_residual, dec_residual, latent_dim, batch):

    def mlp_stack(act, w1_ref, b1_ref, w2_ref, b2_ref, residual):
        # Static unroll over layers; stacked weights are already resident in
        # VMEM, so each layer is just two MXU matmuls + GELU.
        for l, res in enumerate(residual):
            h = jnp.dot(act.astype(jnp.bfloat16), w1_ref[l],
                        preferred_element_type=jnp.float32) + b1_ref[l]
            h = _gelu_kernel(h)                            # dropout(p=0) is a no-op
            out = jnp.dot(h.astype(jnp.bfloat16), w2_ref[l],
                          preferred_element_type=jnp.float32) + b2_ref[l]
            act = out + act if res else out
        return act

    # cropped rfft2 (norm='forward') folded in as a dense DFT matmul
    sig = jnp.dot(x_ref[...], dft_ref[...], preferred_element_type=jnp.float32)

    # encoder
    enc = mlp_stack(sig, ew1_ref, eb1_ref, ew2_ref, eb2_ref, enc_residual)

    # split m / std without lane-unaligned slicing:
    #   m   = lanes [0, latent)        -> lane mask (exact)
    #   std = lanes [latent, 2*latent) -> 0/1 selection matmul (exact, f32)
    lane = jax.lax.broadcasted_iota(jnp.int32, enc.shape, 1)
    row = jax.lax.broadcasted_iota(jnp.int32, enc.shape, 0)
    m = jnp.where(lane < latent_dim, enc, 0.0)
    std = jnp.dot(enc, sels_ref[...], preferred_element_type=jnp.float32)

    # reparameterization trick (eps is pre-padded; its padded lanes/rows are 0)
    z = m + jnp.exp(0.5 * std) * eps_ref[...]

    # KL reduced fully in-kernel to an SMEM scalar.  Padded batch rows carry
    # bias-derived (non-zero) m/std, so mask rows >= batch and lanes >= latent.
    valid = (lane < latent_dim) & (row < batch)
    kl_terms = jnp.where(valid, 1.0 + std - jnp.exp(std) - m * m, 0.0)
    kl_ref[0, 0] = (-0.5 / batch) * jnp.sum(kl_terms)

    # decoder
    dec = mlp_stack(z, dw1_ref, db1_ref, dw2_ref, db2_ref, dec_residual)
    dec_ref[...] = dec

    # zero-filled irfft2 (norm='forward') folded in as a dense IDFT matmul
    sample_ref[...] = jnp.dot(dec.astype(jnp.bfloat16), idft_ref[...],
                              preferred_element_type=jnp.float32)


# ---------------------------------------------------------------------------
# Wrapper around the single pallas_call.
# ---------------------------------------------------------------------------
def dft_vae_forward(arrays, x, eps, *, cfg):
    B, C, H, W = x.shape
    crop, latent = cfg['crop_dim'], cfg['latent_dim']
    FP, HWp = cfg['feat_p'], cfg['hw_p']
    HW = C * H * W
    Bp = _round_up(max(B, SUB), SUB)

    xp = _pad2(x.reshape(B, HW), Bp, HWp).astype(jnp.bfloat16)
    epsp = _pad2(eps.astype(jnp.float32), Bp, FP)

    kern = functools.partial(
        _fused_vae_kernel,
        enc_residual=cfg['enc_res'], dec_residual=cfg['dec_res'],
        latent_dim=latent, batch=B)

    vmem = pl.BlockSpec(memory_space=pltpu.MemorySpace.VMEM)
    smem = pl.BlockSpec(memory_space=pltpu.MemorySpace.SMEM)

    # TODO(synk): when B scales past a few sublane tiles, add a batch grid
    # axis with dimension_semantics=("parallel",) so both v7x TensorCores get
    # work; at B=2 a single grid-less invocation is optimal.
    dec_p, sample_p, kl = pl.pallas_call(
        kern,
        out_shape=(jax.ShapeDtypeStruct((Bp, FP), jnp.float32),
                   jax.ShapeDtypeStruct((Bp, HWp), jnp.float32),
                   jax.ShapeDtypeStruct((1, 1), jnp.float32)),
        in_specs=[vmem] * 13,
        out_specs=(vmem, vmem, smem),
    )(xp, arrays['dft'],
      arrays['ew1'], arrays['eb1'], arrays['ew2'], arrays['eb2'],
      arrays['sels'], epsp,
      arrays['dw1'], arrays['db1'], arrays['dw2'], arrays['db2'],
      arrays['idft'])

    F = crop * crop * 2
    sig = dec_p[:B, :F].reshape(B, C, crop, crop, 2)
    # TODO(synk): complex packing (view_as_complex) has no Pallas dtype; the
    # real/imag interleave -> complex64 view stays in the wrapper.
    signal = jax.lax.complex(sig[..., 0], sig[..., 1])
    sample = sample_p[:B, :HW].reshape(B, C, H, W)
    return signal, sample, kl[0, 0]


# ---------------------------------------------------------------------------
# Parameter construction (PyTorch-Linear-style uniform init) + packing.
# ---------------------------------------------------------------------------
def _init_linear(key, in_d, out_d):
    k1, k2 = jax.random.split(key)
    bound = 1.0 / np.sqrt(in_d)
    w = jax.random.uniform(k1, (in_d, out_d), jnp.float32, -bound, bound)
    b = jax.random.uniform(k2, (out_d,), jnp.float32, -bound, bound)
    return w, b


def _init_mlp_stack(key, dims):
    layers = []
    for i in range(len(dims) - 1):
        key, k1, k2 = jax.random.split(key, 3)
        in_d, out_d = dims[i], dims[i + 1]
        w1, b1 = _init_linear(k1, in_d, out_d)
        w2, b2 = _init_linear(k2, out_d, out_d)
        layers.append(dict(w1=w1, b1=b1, w2=w2, b2=b2,
                           in_d=in_d, out_d=out_d, residual=(in_d == out_d)))
    return layers


def _build_dft_matrices(H, W, crop):
    """Dense real linear maps reproducing the module's cropped rfft2 and
    zero-filled irfft2 (norm='forward', C == 1), built from jnp.fft itself."""
    HW = H * W
    F = crop * crop * 2

    def fwd(col):
        s = jnp.fft.rfft2(col.reshape(1, H, W), norm='forward')[:, :crop, :crop]
        return jnp.stack([s.real, s.imag], axis=-1).reshape(-1)

    def inv(col):
        c = col.reshape(1, crop, crop, 2)
        full = jnp.zeros((1, H, W // 2 + 1), jnp.complex64)
        full = full.at[:, :crop, :crop].set(jax.lax.complex(c[..., 0], c[..., 1]))
        return jnp.fft.irfft2(full, norm='forward').reshape(-1)

    D = jax.vmap(fwd)(jnp.eye(HW, dtype=jnp.float32))      # (HW, F)
    Dinv = jax.vmap(inv)(jnp.eye(F, dtype=jnp.float32))    # (F, HW)
    return D, Dinv


def _pack_stack(layers, fp):
    w1 = jnp.stack([_pad2(l['w1'], fp, fp) for l in layers]).astype(jnp.bfloat16)
    b1 = jnp.stack([_pad2(l['b1'][None, :], 1, fp) for l in layers])   # f32
    w2 = jnp.stack([_pad2(l['w2'], fp, fp) for l in layers]).astype(jnp.bfloat16)
    b2 = jnp.stack([_pad2(l['b2'][None, :], 1, fp) for l in layers])   # f32
    res = tuple(bool(l['residual']) for l in layers)
    return w1, b1, w2, b2, res


def pack_params(enc_raw, dec_raw, shape, crop_dim, latent_dim):
    C, H, W = shape
    assert C == 1, "DFT_VAE's in_dim = crop*crop*2 implies a single channel"
    dims = ([l['in_d'] for l in enc_raw] + [l['out_d'] for l in enc_raw] +
            [l['in_d'] for l in dec_raw] + [l['out_d'] for l in dec_raw])
    fp = _round_up(max(dims), LANE)
    hw_p = _round_up(H * W, LANE)

    D, Dinv = _build_dft_matrices(H, W, crop_dim)
    dft = _pad2(D, hw_p, fp).astype(jnp.bfloat16)
    idft = _pad2(Dinv, fp, hw_p).astype(jnp.bfloat16)

    # 0/1 selection matrix that moves lanes [latent, 2*latent) -> [0, latent)
    sels = np.zeros((fp, fp), np.float32)
    sels[latent_dim + np.arange(latent_dim), np.arange(latent_dim)] = 1.0

    ew1, eb1, ew2, eb2, enc_res = _pack_stack(enc_raw, fp)
    dw1, db1, dw2, db2, dec_res = _pack_stack(dec_raw, fp)

    arrays = dict(dft=dft, idft=idft, sels=jnp.asarray(sels),
                  ew1=ew1, eb1=eb1, ew2=ew2, eb2=eb2,
                  dw1=dw1, db1=db1, dw2=dw2, db2=db2)
    cfg = dict(crop_dim=crop_dim, latent_dim=latent_dim, feat_p=fp, hw_p=hw_p,
               enc_res=enc_res, dec_res=dec_res)
    return arrays, cfg


# ---------------------------------------------------------------------------
# Pure-JAX full-precision reference (same math, exact erf GELU, real FFTs).
# ---------------------------------------------------------------------------
def _gelu_ref(x):
    return 0.5 * x * (1.0 + jax.lax.erf(x * 0.7071067811865476))


def _mlp_stack_ref(x, layers):
    for l in layers:
        h = _gelu_ref(jnp.dot(x, l['w1'], precision=jax.lax.Precision.HIGHEST) + l['b1'])
        out = jnp.dot(h, l['w2'], precision=jax.lax.Precision.HIGHEST) + l['b2']
        x = out + x if l['residual'] else out
    return x


def reference_forward(enc_raw, dec_raw, x, eps, crop, latent):
    B, C, H, W = x.shape
    sig = jnp.fft.rfft2(x, norm='forward')[:, :, :crop, :crop]
    flat = jnp.stack([sig.real, sig.imag], -1).reshape(B, -1).astype(jnp.float32)
    enc = _mlp_stack_ref(flat, enc_raw)
    m, std = jnp.split(enc, 2, axis=1)
    z = m + jnp.exp(0.5 * std) * eps
    kl = jnp.mean(-0.5 * jnp.sum(1.0 + std - jnp.exp(std) - m ** 2, axis=1))
    dec = _mlp_stack_ref(z, dec_raw)
    sig_d = dec.reshape(B, C, crop, crop, 2)
    sig_c = jax.lax.complex(sig_d[..., 0], sig_d[..., 1])
    full = jnp.zeros((B, C, H, W // 2 + 1), jnp.complex64)
    full = full.at[:, :, :crop, :crop].set(sig_c)
    sample = jnp.fft.irfft2(full, norm='forward').astype(jnp.float32)
    return sig_c, sample, kl


if __name__ == "__main__":
    # Small configuration consistent with the module's constructor.
    C, H, W = 1, 16, 16
    layer, hidden_dim, crop_dim, latent_dim = 2, 32, 5, 8
    B = 2

    in_dim = crop_dim * crop_dim * 2
    enc_dims = [in_dim] + [hidden_dim] * layer + [latent_dim * 2]
    dec_dims = [latent_dim] + [hidden_dim] * layer + [in_dim]

    key = jax.random.PRNGKey(0)
    k_enc, k_dec, k_x, k_eps = jax.random.split(key, 4)
    enc_raw = _init_mlp_stack(k_enc, enc_dims)
    dec_raw = _init_mlp_stack(k_dec, dec_dims)
    arrays, cfg = pack_params(enc_raw, dec_raw, (C, H, W), crop_dim, latent_dim)

    x = jax.random.normal(k_x, (B, C, H, W), jnp.float32)
    # reparam_trick's randn_like is drawn deterministically here and fed in.
    eps = jax.random.normal(k_eps, (B, latent_dim), jnp.float32)

    fwd = jax.jit(functools.partial(dft_vae_forward, cfg=cfg))
    signal, sample, kl = fwd(arrays, x, eps)
    jax.block_until_ready((signal, sample, kl))

    sig_ref, samp_ref, kl_ref = reference_forward(enc_raw, dec_raw, x, eps,
                                                  crop_dim, latent_dim)

    def max_rel(a, b):
        a = np.asarray(a)
        b = np.asarray(b)
        return float(np.max(np.abs(a - b)) / (np.max(np.abs(b)) + 1e-12))

    assert signal.shape == (B, C, crop_dim, crop_dim) and signal.dtype == jnp.complex64
    assert sample.shape == (B, C, H, W) and sample.dtype == jnp.float32
    # bf16 MXU operands -> compare on a max-norm relative basis.
    assert max_rel(signal, sig_ref) < 3e-2, ("signal", max_rel(signal, sig_ref))
    assert max_rel(sample, samp_ref) < 3e-2, ("sample", max_rel(sample, samp_ref))
    assert abs(float(kl) - float(kl_ref)) < 5e-2 * abs(float(kl_ref)) + 1e-3, \
        ("kl", float(kl), float(kl_ref))

    print("KERNEL_OK")
</pallas_src>

<mosaic_0001>
module attributes {stable_mosaic.version = 11 : i64} {
  func.func @_fused_vae_kernel(%arg0: memref<8x256xbf16, #tpu.memory_space<vmem>>, %arg1: memref<256x128xbf16, #tpu.memory_space<vmem>>, %arg2: memref<3x128x128xbf16, #tpu.memory_space<vmem>>, %arg3: memref<3x1x128xf32, #tpu.memory_space<vmem>>, %arg4: memref<3x128x128xbf16, #tpu.memory_space<vmem>>, %arg5: memref<3x1x128xf32, #tpu.memory_space<vmem>>, %arg6: memref<128x128xf32, #tpu.memory_space<vmem>>, %arg7: memref<8x128xf32, #tpu.memory_space<vmem>>, %arg8: memref<3x128x128xbf16, #tpu.memory_space<vmem>>, %arg9: memref<3x1x128xf32, #tpu.memory_space<vmem>>, %arg10: memref<3x128x128xbf16, #tpu.memory_space<vmem>>, %arg11: memref<3x1x128xf32, #tpu.memory_space<vmem>>, %arg12: memref<128x256xbf16, #tpu.memory_space<vmem>>, %arg13: memref<8x128xf32, #tpu.memory_space<vmem>>, %arg14: memref<8x256xf32, #tpu.memory_space<vmem>>, %arg15: memref<1x1xf32, #tpu.memory_space<smem>>) attributes {dimension_semantics = [], scalar_prefetch = 0 : i64, scratch_operands = 0 : i64, tpu.core_type = #tpu.core_type<tc>} {
    %c0 = arith.constant 0 : index
    %c0_0 = arith.constant 0 : index
    %0 = vector.load %arg0[%c0, %c0_0] : memref<8x256xbf16, #tpu.memory_space<vmem>>, vector<8x256xbf16>
    %c0_1 = arith.constant 0 : index
    %c0_2 = arith.constant 0 : index
    %1 = vector.load %arg1[%c0_1, %c0_2] : memref<256x128xbf16, #tpu.memory_space<vmem>>, vector<256x128xbf16>
    %cst = arith.constant dense<0.000000e+00> : vector<8x128xf32>
    %2 = tpu.matmul %0, %1, %cst {dimension_numbers = #tpu.dot_dimension_numbers<[1], [0], [0], [1], [0, 0, 1, 1], [], []>} : vector<8x256xbf16>, vector<256x128xbf16>, vector<8x128xf32> -> vector<8x128xf32>
    %3 = arith.truncf %2 : vector<8x128xf32> to vector<8x128xbf16>
    %c0_3 = arith.constant 0 : index
    %c0_4 = arith.constant 0 : index
    %c0_5 = arith.constant 0 : index
    %4 = vector.load %arg2[%c0_3, %c0_4, %c0_5] : memref<3x128x128xbf16, #tpu.memory_space<vmem>>, vector<1x128x128xbf16>
    %5 = vector.shape_cast %4 : vector<1x128x128xbf16> to vector<128x128xbf16>
    %cst_6 = arith.constant dense<0.000000e+00> : vector<8x128xf32>
    %6 = tpu.matmul %3, %5, %cst_6 {dimension_numbers = #tpu.dot_dimension_numbers<[1], [0], [0], [1], [0, 0, 1, 1], [], []>} : vector<8x128xbf16>, vector<128x128xbf16>, vector<8x128xf32> -> vector<8x128xf32>
    %c0_7 = arith.constant 0 : index
    %c0_8 = arith.constant 0 : index
    %c0_9 = arith.constant 0 : index
    %7 = vector.load %arg3[%c0_7, %c0_8, %c0_9] : memref<3x1x128xf32, #tpu.memory_space<vmem>>, vector<1x1x128xf32>
    %8 = vector.shape_cast %7 : vector<1x1x128xf32> to vector<1x128xf32>
    %9 = vector.broadcast %8 : vector<1x128xf32> to vector<8x128xf32>
    %10 = arith.addf %6, %9 : vector<8x128xf32>
    %cst_10 = arith.constant 0.707106769 : f32
    %11 = vector.broadcast %cst_10 : f32 to vector<8x128xf32>
    %12 = arith.mulf %10, %11 : vector<8x128xf32>
    %13 = math.absf %12 : vector<8x128xf32>
    %cst_11 = arith.constant 0.327591091 : f32
    %14 = vector.broadcast %cst_11 : f32 to vector<8x128xf32>
    %15 = arith.mulf %14, %13 : vector<8x128xf32>
    %cst_12 = arith.constant 1.000000e+00 : f32
    %16 = vector.broadcast %cst_12 : f32 to vector<8x128xf32>
    %17 = arith.addf %16, %15 : vector<8x128xf32>
    %18 = tpu.reciprocal %17 {approx = true} : vector<8x128xf32> -> vector<8x128xf32>
    %cst_13 = arith.constant 1.06140542 : f32
    %19 = vector.broadcast %cst_13 : f32 to vector<8x128xf32>
    %20 = arith.mulf %19, %18 : vector<8x128xf32>
    %cst_14 = arith.constant -1.45315206 : f32
    %21 = vector.broadcast %cst_14 : f32 to vector<8x128xf32>
    %22 = arith.addf %20, %21 : vector<8x128xf32>
    %23 = arith.mulf %22, %18 : vector<8x128xf32>
    %cst_15 = arith.constant 1.42141378 : f32
    %24 = vector.broadcast %cst_15 : f32 to vector<8x128xf32>
    %25 = arith.addf %23, %24 : vector<8x128xf32>
    %26 = arith.mulf %25, %18 : vector<8x128xf32>
    %cst_16 = arith.constant -0.284496725 : f32
    %27 = vector.broadcast %cst_16 : f32 to vector<8x128xf32>
    %28 = arith.addf %26, %27 : vector<8x128xf32>
    %29 = arith.mulf %28, %18 : vector<8x128xf32>
    %cst_17 = arith.constant 0.254829586 : f32
    %30 = vector.broadcast %cst_17 : f32 to vector<8x128xf32>
    %31 = arith.addf %29, %30 : vector<8x128xf32>
    %32 = arith.mulf %31, %18 : vector<8x128xf32>
    %cst_18 = arith.constant 0.000000e+00 : f32
    %33 = vector.broadcast %cst_18 : f32 to vector<8x128xf32>
    %34 = arith.subf %33, %13 : vector<8x128xf32>
    %35 = arith.mulf %34, %13 : vector<8x128xf32>
    %36 = math.exp %35 : vector<8x128xf32>
    %37 = arith.mulf %32, %36 : vector<8x128xf32>
    %cst_19 = arith.constant 1.000000e+00 : f32
    %38 = vector.broadcast %cst_19 : f32 to vector<8x128xf32>
    %39 = arith.subf %38, %37 : vector<8x128xf32>
    %cst_20 = arith.constant 0.000000e+00 : f32
    %40 = vector.broadcast %cst_20 : f32 to vector<8x128xf32>
    %41 = arith.cmpf olt, %12, %40 : vector<8x128xf32>
    %cst_21 = arith.constant 0.000000e+00 : f32
    %42 = vector.broadcast %cst_21 : f32 to vector<8x128xf32>
    %43 = arith.subf %42, %39 : vector<8x128xf32>
    %44 = arith.select %41, %43, %39 : vector<8x128xi1>, vector<8x128xf32>
    %cst_22 = arith.constant 5.000000e-01 : f32
    %45 = vector.broadcast %cst_22 : f32 to vector<8x128xf32>
    %46 = arith.mulf %45, %10 : vector<8x128xf32>
    %cst_23 = arith.constant 1.000000e+00 : f32
    %47 = vector.broadcast %cst_23 : f32 to vector<8x128xf32>
    %48 = arith.addf %47, %44 : vector<8x128xf32>
    %49 = arith.mulf %46, %48 : vector<8x128xf32>
    %50 = arith.truncf %49 : vector<8x128xf32> to vector<8x128xbf16>
    %c0_24 = arith.constant 0 : index
    %c0_25 = arith.constant 0 : index
    %c0_26 = arith.constant 0 : index
    %51 = vector.load %arg4[%c0_24, %c0_25, %c0_26] : memref<3x128x128xbf16, #tpu.memory_space<vmem>>, vector<1x128x128xbf16>
    %52 = vector.shape_cast %51 : vector<1x128x128xbf16> to vector<128x128xbf16>
    %cst_27 = arith.constant dense<0.000000e+00> : vector<8x128xf32>
    %53 = tpu.matmul %50, %52, %cst_27 {dimension_numbers = #tpu.dot_dimension_numbers<[1], [0], [0], [1], [0, 0, 1, 1], [], []>} : vector<8x128xbf16>, vector<128x128xbf16>, vector<8x128xf32> -> vector<8x128xf32>
    %c0_28 = arith.constant 0 : index
    %c0_29 = arith.constant 0 : index
    %c0_30 = arith.constant 0 : index
    %54 = vector.load %arg5[%c0_28, %c0_29, %c0_30] : memref<3x1x128xf32, #tpu.memory_space<vmem>>, vector<1x1x128xf32>
    %55 = vector.shape_cast %54 : vector<1x1x128xf32> to vector<1x128xf32>
    %56 = vector.broadcast %55 : vector<1x128xf32> to vector<8x128xf32>
    %57 = arith.addf %53, %56 : vector<8x128xf32>
    %58 = arith.truncf %57 : vector<8x128xf32> to vector<8x128xbf16>
    %c1 = arith.constant 1 : index
    %c0_31 = arith.constant 0 : index
    %c0_32 = arith.constant 0 : index
    %59 = vector.load %arg2[%c1, %c0_31, %c0_32] : memref<3x128x128xbf16, #tpu.memory_space<vmem>>, vector<1x128x128xbf16>
    %60 = vector.shape_cast %59 : vector<1x128x128xbf16> to vector<128x128xbf16>
    %cst_33 = arith.constant dense<0.000000e+00> : vector<8x128xf32>
    %61 = tpu.matmul %58, %60, %cst_33 {dimension_numbers = #tpu.dot_dimension_numbers<[1], [0], [0], [1], [0, 0, 1, 1], [], []>} : vector<8x128xbf16>, vector<128x128xbf16>, vector<8x128xf32> -> vector<8x128xf32>
    %c1_34 = arith.constant 1 : index
    %c0_35 = arith.constant 0 : index
    %c0_36 = arith.constant 0 : index
    %62 = vector.load %arg3[%c1_34, %c0_35, %c0_36] : memref<3x1x128xf32, #tpu.memory_space<vmem>>, vector<1x1x128xf32>
    %63 = vector.shape_cast %62 : vector<1x1x128xf32> to vector<1x128xf32>
    %64 = vector.broadcast %63 : vector<1x128xf32> to vector<8x128xf32>
    %65 = arith.addf %61, %64 : vector<8x128xf32>
    %cst_37 = arith.constant 0.707106769 : f32
    %66 = vector.broadcast %cst_37 : f32 to vector<8x128xf32>
    %67 = arith.mulf %65, %66 : vector<8x128xf32>
    %68 = math.absf %67 : vector<8x128xf32>
    %cst_38 = arith.constant 0.327591091 : f32
    %69 = vector.broadcast %cst_38 : f32 to vector<8x128xf32>
    %70 = arith.mulf %69, %68 : vector<8x128xf32>
    %cst_39 = arith.constant 1.000000e+00 : f32
    %71 = vector.broadcast %cst_39 : f32 to vector<8x128xf32>
    %72 = arith.addf %71, %70 : vector<8x128xf32>
    %73 = tpu.reciprocal %72 {approx = true} : vector<8x128xf32> -> vector<8x128xf32>
    %cst_40 = arith.constant 1.06140542 : f32
    %74 = vector.broadcast %cst_40 : f32 to vector<8x128xf32>
    %75 = arith.mulf %74, %73 : vector<8x128xf32>
    %cst_41 = arith.constant -1.45315206 : f32
    %76 = vector.broadcast %cst_41 : f32 to vector<8x128xf32>
    %77 = arith.addf %75, %76 : vector<8x128xf32>
    %78 = arith.mulf %77, %73 : vector<8x128xf32>
    %cst_42 = arith.constant 1.42141378 : f32
    %79 = vector.broadcast %cst_42 : f32 to vector<8x128xf32>
    %80 = arith.addf %78, %79 : vector<8x128xf32>
    %81 = arith.mulf %80, %73 : vector<8x128xf32>
    %cst_43 = arith.constant -0.284496725 : f32
    %82 = vector.broadcast %cst_43 : f32 to vector<8x128xf32>
    %83 = arith.addf %81, %82 : vector<8x128xf32>
    %84 = arith.mulf %83, %73 : vector<8x128xf32>
    %cst_44 = arith.constant 0.254829586 : f32
    %85 = vector.broadcast %cst_44 : f32 to vector<8x128xf32>
    %86 = arith.addf %84, %85 : vector<8x128xf32>
    %87 = arith.mulf %86, %73 : vector<8x128xf32>
    %cst_45 = arith.constant 0.000000e+00 : f32
    %88 = vector.broadcast %cst_45 : f32 to vector<8x128xf32>
    %89 = arith.subf %88, %68 : vector<8x128xf32>
    %90 = arith.mulf %89, %68 : vector<8x128xf32>
    %91 = math.exp %90 : vector<8x128xf32>
    %92 = arith.mulf %87, %91 : vector<8x128xf32>
    %cst_46 = arith.constant 1.000000e+00 : f32
    %93 = vector.broadcast %cst_46 : f32 to vector<8x128xf32>
    %94 = arith.subf %93, %92 : vector<8x128xf32>
    %cst_47 = arith.constant 0.000000e+00 : f32
    %95 = vector.broadcast %cst_47 : f32 to vector<8x128xf32>
    %96 = arith.cmpf olt, %67, %95 : vector<8x128xf32>
    %cst_48 = arith.constant 0.000000e+00 : f32
    %97 = vector.broadcast %cst_48 : f32 to vector<8x128xf32>
    %98 = arith.subf %97, %94 : vector<8x128xf32>
    %99 = arith.select %96, %98, %94 : vector<8x128xi1>, vector<8x128xf32>
    %cst_49 = arith.constant 5.000000e-01 : f32
    %100 = vector.broadcast %cst_49 : f32 to vector<8x128xf32>
    %101 = arith.mulf %100, %65 : vector<8x128xf32>
    %cst_50 = arith.constant 1.000000e+00 : f32
    %102 = vector.broadcast %cst_50 : f32 to vector<8x128xf32>
    %103 = arith.addf %102, %99 : vector<8x128xf32>
    %104 = arith.mulf %101, %103 : vector<8x128xf32>
    %105 = arith.truncf %104 : vector<8x128xf32> to vector<8x128xbf16>
    %c1_51 = arith.constant 1 : index
    %c0_52 = arith.constant 0 : index
    %c0_53 = arith.constant 0 : index
    %106 = vector.load %arg4[%c1_51, %c0_52, %c0_53] : memref<3x128x128xbf16, #tpu.memory_space<vmem>>, vector<1x128x128xbf16>
    %107 = vector.shape_cast %106 : vector<1x128x128xbf16> to vector<128x128xbf16>
    %cst_54 = arith.constant dense<0.000000e+00> : vector<8x128xf32>
    %108 = tpu.matmul %105, %107, %cst_54 {dimension_numbers = #tpu.dot_dimension_numbers<[1], [0], [0], [1], [0, 0, 1, 1], [], []>} : vector<8x128xbf16>, vector<128x128xbf16>, vector<8x128xf32> -> vector<8x128xf32>
    %c1_55 = arith.constant 1 : index
    %c0_56 = arith.constant 0 : index
    %c0_57 = arith.constant 0 : index
    %109 = vector.load %arg5[%c1_55, %c0_56, %c0_57] : memref<3x1x128xf32, #tpu.memory_space<vmem>>, vector<1x1x128xf32>
    %110 = vector.shape_cast %109 : vector<1x1x128xf32> to vector<1x128xf32>
    %111 = vector.broadcast %110 : vector<1x128xf32> to vector<8x128xf32>
    %112 = arith.addf %108, %111 : vector<8x128xf32>
    %113 = arith.addf %112, %57 : vector<8x128xf32>
    %114 = arith.truncf %113 : vector<8x128xf32> to vector<8x128xbf16>
    %c2 = arith.constant 2 : index
    %c0_58 = arith.constant 0 : index
    %c0_59 = arith.constant 0 : index
    %115 = vector.load %arg2[%c2, %c0_58, %c0_59] : memref<3x128x128xbf16, #tpu.memory_space<vmem>>, vector<1x128x128xbf16>
    %116 = vector.shape_cast %115 : vector<1x128x128xbf16> to vector<128x128xbf16>
    %cst_60 = arith.constant dense<0.000000e+00> : vector<8x128xf32>
    %117 = tpu.matmul %114, %116, %cst_60 {dimension_numbers = #tpu.dot_dimension_numbers<[1], [0], [0], [1], [0, 0, 1, 1], [], []>} : vector<8x128xbf16>, vector<128x128xbf16>, vector<8x128xf32> -> vector<8x128xf32>
    %c2_61 = arith.constant 2 : index
    %c0_62 = arith.constant 0 : index
    %c0_63 = arith.constant 0 : index
    %118 = vector.load %arg3[%c2_61, %c0_62, %c0_63] : memref<3x1x128xf32, #tpu.memory_space<vmem>>, vector<1x1x128xf32>
    %119 = vector.shape_cast %118 : vector<1x1x128xf32> to vector<1x128xf32>
    %120 = vector.broadcast %119 : vector<1x128xf32> to vector<8x128xf32>
    %121 = arith.addf %117, %120 : vector<8x128xf32>
    %cst_64 = arith.constant 0.707106769 : f32
    %122 = vector.broadcast %cst_64 : f32 to vector<8x128xf32>
    %123 = arith.mulf %121, %122 : vector<8x128xf32>
    %124 = math.absf %123 : vector<8x128xf32>
    %cst_65 = arith.constant 0.327591091 : f32
    %125 = vector.broadcast %cst_65 : f32 to vector<8x128xf32>
    %126 = arith.mulf %125, %124 : vector<8x128xf32>
    %cst_66 = arith.constant 1.000000e+00 : f32
    %127 = vector.broadcast %cst_66 : f32 to vector<8x128xf32>
    %128 = arith.addf %127, %126 : vector<8x128xf32>
    %129 = tpu.reciprocal %128 {approx = true} : vector<8x128xf32> -> vector<8x128xf32>
    %cst_67 = arith.constant 1.06140542 : f32
    %130 = vector.broadcast %cst_67 : f32 to vector<8x128xf32>
    %131 = arith.mulf %130, %129 : vector<8x128xf32>
    %cst_68 = arith.constant -1.45315206 : f32
    %132 = vector.broadcast %cst_68 : f32 to vector<8x128xf32>
    %133 = arith.addf %131, %132 : vector<8x128xf32>
    %134 = arith.mulf %133, %129 : vector<8x128xf32>
    %cst_69 = arith.constant 1.42141378 : f32
    %135 = vector.broadcast %cst_69 : f32 to vector<8x128xf32>
    %136 = arith.addf %134, %135 : vector<8x128xf32>
    %137 = arith.mulf %136, %129 : vector<8x128xf32>
    %cst_70 = arith.constant -0.284496725 : f32
    %138 = vector.broadcast %cst_70 : f32 to vector<8x128xf32>
    %139 = arith.addf %137, %138 : vector<8x128xf32>
    %140 = arith.mulf %139, %129 : vector<8x128xf32>
    %cst_71 = arith.constant 0.254829586 : f32
    %141 = vector.broadcast %cst_71 : f32 to vector<8x128xf32>
    %142 = arith.addf %140, %141 : vector<8x128xf32>
    %143 = arith.mulf %142, %129 : vector<8x128xf32>
    %cst_72 = arith.constant 0.000000e+00 : f32
    %144 = vector.broadcast %cst_72 : f32 to vector<8x128xf32>
    %145 = arith.subf %144, %124 : vector<8x128xf32>
    %146 = arith.mulf %145, %124 : vector<8x128xf32>
    %147 = math.exp %146 : vector<8x128xf32>
    %148 = arith.mulf %143, %147 : vector<8x128xf32>
    %cst_73 = arith.constant 1.000000e+00 : f32
    %149 = vector.broadcast %cst_73 : f32 to vector<8x128xf32>
    %150 = arith.subf %149, %148 : vector<8x128xf32>
    %cst_74 = arith.constant 0.000000e+00 : f32
    %151 = vector.broadcast %cst_74 : f32 to vector<8x128xf32>
    %152 = arith.cmpf olt, %123, %151 : vector<8x128xf32>
    %cst_75 = arith.constant 0.000000e+00 : f32
    %153 = vector.broadcast %cst_75 : f32 to vector<8x128xf32>
    %154 = arith.subf %153, %150 : vector<8x128xf32>
    %155 = arith.select %152, %154, %150 : vector<8x128xi1>, vector<8x128xf32>
    %cst_76 = arith.constant 5.000000e-01 : f32
    %156 = vector.broadcast %cst_76 : f32 to vector<8x128xf32>
    %157 = arith.mulf %156, %121 : vector<8x128xf32>
    %cst_77 = arith.constant 1.000000e+00 : f32
    %158 = vector.broadcast %cst_77 : f32 to vector<8x128xf32>
    %159 = arith.addf %158, %155 : vector<8x128xf32>
    %160 = arith.mulf %157, %159 : vector<8x128xf32>
    %161 = arith.truncf %160 : vector<8x128xf32> to vector<8x128xbf16>
    %c2_78 = arith.constant 2 : index
    %c0_79 = arith.constant 0 : index
    %c0_80 = arith.constant 0 : index
    %162 = vector.load %arg4[%c2_78, %c0_79, %c0_80] : memref<3x128x128xbf16, #tpu.memory_space<vmem>>, vector<1x128x128xbf16>
    %163 = vector.shape_cast %162 : vector<1x128x128xbf16> to vector<128x128xbf16>
    %cst_81 = arith.constant dense<0.000000e+00> : vector<8x128xf32>
    %164 = tpu.matmul %161, %163, %cst_81 {dimension_numbers = #tpu.dot_dimension_numbers<[1], [0], [0], [1], [0, 0, 1, 1], [], []>} : vector<8x128xbf16>, vector<128x128xbf16>, vector<8x128xf32> -> vector<8x128xf32>
    %c2_82 = arith.constant 2 : index
    %c0_83 = arith.constant 0 : index
    %c0_84 = arith.constant 0 : index
    %165 = vector.load %arg5[%c2_82, %c0_83, %c0_84] : memref<3x1x128xf32, #tpu.memory_space<vmem>>, vector<1x1x128xf32>
    %166 = vector.shape_cast %165 : vector<1x1x128xf32> to vector<1x128xf32>
    %167 = vector.broadcast %166 : vector<1x128xf32> to vector<8x128xf32>
    %168 = arith.addf %164, %167 : vector<8x128xf32>
    %169 = tpu.iota {dimensions = array<i32: 1>} : vector<8x128xi32>
    %170 = tpu.iota {dimensions = array<i32: 0>} : vector<8x128xi32>
    %c8_i32 = arith.constant 8 : i32
    %171 = vector.broadcast %c8_i32 : i32 to vector<8x128xi32>
    %172 = arith.cmpi slt, %169, %171 : vector<8x128xi32>
    %cst_85 = arith.constant 0.000000e+00 : f32
    %173 = vector.broadcast %cst_85 : f32 to vector<8x128xf32>
    %174 = arith.select %172, %168, %173 : vector<8x128xi1>, vector<8x128xf32>
    %c0_86 = arith.constant 0 : index
    %c0_87 = arith.constant 0 : index
    %175 = vector.load %arg6[%c0_86, %c0_87] : memref<128x128xf32, #tpu.memory_space<vmem>>, vector<128x128xf32>
    %cst_88 = arith.constant dense<0.000000e+00> : vector<8x128xf32>
    %176 = tpu.matmul %168, %175, %cst_88 {dimension_numbers = #tpu.dot_dimension_numbers<[1], [0], [0], [1], [0, 0, 1, 1], [], []>} : vector<8x128xf32>, vector<128x128xf32>, vector<8x128xf32> -> vector<8x128xf32>
    %cst_89 = arith.constant 5.000000e-01 : f32
    %177 = vector.broadcast %cst_89 : f32 to vector<8x128xf32>
    %178 = arith.mulf %177, %176 : vector<8x128xf32>
    %179 = math.exp %178 : vector<8x128xf32>
    %c0_90 = arith.constant 0 : index
    %c0_91 = arith.constant 0 : index
    %180 = vector.load %arg7[%c0_90, %c0_91] : memref<8x128xf32, #tpu.memory_space<vmem>>, vector<8x128xf32>
    %181 = arith.mulf %179, %180 : vector<8x128xf32>
    %182 = arith.addf %174, %181 : vector<8x128xf32>
    %c8_i32_92 = arith.constant 8 : i32
    %183 = vector.broadcast %c8_i32_92 : i32 to vector<8x128xi32>
    %184 = arith.cmpi slt, %169, %183 : vector<8x128xi32>
    %c2_i32 = arith.constant 2 : i32
    %185 = vector.broadcast %c2_i32 : i32 to vector<8x128xi32>
    %186 = arith.cmpi slt, %170, %185 : vector<8x128xi32>
    %187 = arith.andi %184, %186 : vector<8x128xi1>
    %cst_93 = arith.constant 1.000000e+00 : f32
    %188 = vector.broadcast %cst_93 : f32 to vector<8x128xf32>
    %189 = arith.addf %188, %176 : vector<8x128xf32>
    %190 = math.exp %176 : vector<8x128xf32>
    %191 = arith.subf %189, %190 : vector<8x128xf32>
    %192 = arith.mulf %174, %174 : vector<8x128xf32>
    %193 = arith.subf %191, %192 : vector<8x128xf32>
    %cst_94 = arith.constant 0.000000e+00 : f32
    %194 = vector.broadcast %cst_94 : f32 to vector<8x128xf32>
    %195 = arith.select %187, %193, %194 : vector<8x128xi1>, vector<8x128xf32>
    %196 = vector.shape_cast %195 : vector<8x128xf32> to vector<1x8x128xf32>
    %cst_95 = arith.constant dense<0.000000e+00> : vector<1xf32>
    %197 = vector.multi_reduction <add>, %196, %cst_95 [1, 2] : vector<1x8x128xf32> to vector<1xf32>
    %198 = vector.shape_cast %197 : vector<1xf32> to vector<1x1x1xf32>
    %199 = vector.extract %198[0, 0, 0] : f32 from vector<1x1x1xf32>
    %cst_96 = arith.constant -2.500000e-01 : f32
    %200 = arith.mulf %cst_96, %199 : f32
    %c0_97 = arith.constant 0 : index
    %c0_98 = arith.constant 0 : index
    %201 = memref.load %arg15[%c0_97, %c0_98] : memref<1x1xf32, #tpu.memory_space<smem>>
    memref.store %200, %arg15[%c0_97, %c0_98] : memref<1x1xf32, #tpu.memory_space<smem>>
    %202 = arith.truncf %182 : vector<8x128xf32> to vector<8x128xbf16>
    %c0_99 = arith.constant 0 : index
    %c0_100 = arith.constant 0 : index
    %c0_101 = arith.constant 0 : index
    %203 = vector.load %arg8[%c0_99, %c0_100, %c0_101] : memref<3x128x128xbf16, #tpu.memory_space<vmem>>, vector<1x128x128xbf16>
    %204 = vector.shape_cast %203 : vector<1x128x128xbf16> to vector<128x128xbf16>
    %cst_102 = arith.constant dense<0.000000e+00> : vector<8x128xf32>
    %205 = tpu.matmul %202, %204, %cst_102 {dimension_numbers = #tpu.dot_dimension_numbers<[1], [0], [0], [1], [0, 0, 1, 1], [], []>} : vector<8x128xbf16>, vector<128x128xbf16>, vector<8x128xf32> -> vector<8x128xf32>
    %c0_103 = arith.constant 0 : index
    %c0_104 = arith.constant 0 : index
    %c0_105 = arith.constant 0 : index
    %206 = vector.load %arg9[%c0_103, %c0_104, %c0_105] : memref<3x1x128xf32, #tpu.memory_space<vmem>>, vector<1x1x128xf32>
    %207 = vector.shape_cast %206 : vector<1x1x128xf32> to vector<1x128xf32>
    %208 = vector.broadcast %207 : vector<1x128xf32> to vector<8x128xf32>
    %209 = arith.addf %205, %208 : vector<8x128xf32>
    %cst_106 = arith.constant 0.707106769 : f32
    %210 = vector.broadcast %cst_106 : f32 to vector<8x128xf32>
    %211 = arith.mulf %209, %210 : vector<8x128xf32>
    %212 = math.absf %211 : vector<8x128xf32>
    %cst_107 = arith.constant 0.327591091 : f32
    %213 = vector.broadcast %cst_107 : f32 to vector<8x128xf32>
    %214 = arith.mulf %213, %212 : vector<8x128xf32>
    %cst_108 = arith.constant 1.000000e+00 : f32
    %215 = vector.broadcast %cst_108 : f32 to vector<8x128xf32>
    %216 = arith.addf %215, %214 : vector<8x128xf32>
    %217 = tpu.reciprocal %216 {approx = true} : vector<8x128xf32> -> vector<8x128xf32>
    %cst_109 = arith.constant 1.06140542 : f32
    %218 = vector.broadcast %cst_109 : f32 to vector<8x128xf32>
    %219 = arith.mulf %218, %217 : vector<8x128xf32>
    %cst_110 = arith.constant -1.45315206 : f32
    %220 = vector.broadcast %cst_110 : f32 to vector<8x128xf32>
    %221 = arith.addf %219, %220 : vector<8x128xf32>
    %222 = arith.mulf %221, %217 : vector<8x128xf32>
    %cst_111 = arith.constant 1.42141378 : f32
    %223 = vector.broadcast %cst_111 : f32 to vector<8x128xf32>
    %224 = arith.addf %222, %223 : vector<8x128xf32>
    %225 = arith.mulf %224, %217 : vector<8x128xf32>
    %cst_112 = arith.constant -0.284496725 : f32
    %226 = vector.broadcast %cst_112 : f32 to vector<8x128xf32>
    %227 = arith.addf %225, %226 : vector<8x128xf32>
    %228 = arith.mulf %227, %217 : vector<8x128xf32>
    %cst_113 = arith.constant 0.254829586 : f32
    %229 = vector.broadcast %cst_113 : f32 to vector<8x128xf32>
    %230 = arith.addf %228, %229 : vector<8x128xf32>
    %231 = arith.mulf %230, %217 : vector<8x128xf32>
    %cst_114 = arith.constant 0.000000e+00 : f32
    %232 = vector.broadcast %cst_114 : f32 to vector<8x128xf32>
    %233 = arith.subf %232, %212 : vector<8x128xf32>
    %234 = arith.mulf %233, %212 : vector<8x128xf32>
    %235 = math.exp %234 : vector<8x128xf32>
    %236 = arith.mulf %231, %235 : vector<8x128xf32>
    %cst_115 = arith.constant 1.000000e+00 : f32
    %237 = vector.broadcast %cst_115 : f32 to vector<8x128xf32>
    %238 = arith.subf %237, %236 : vector<8x128xf32>
    %cst_116 = arith.constant 0.000000e+00 : f32
    %239 = vector.broadcast %cst_116 : f32 to vector<8x128xf32>
    %240 = arith.cmpf olt, %211, %239 : vector<8x128xf32>
    %cst_117 = arith.constant 0.000000e+00 : f32
    %241 = vector.broadcast %cst_117 : f32 to vector<8x128xf32>
    %242 = arith.subf %241, %238 : vector<8x128xf32>
    %243 = arith.select %240, %242, %238 : vector<8x128xi1>, vector<8x128xf32>
    %cst_118 = arith.constant 5.000000e-01 : f32
    %244 = vector.broadcast %cst_118 : f32 to vector<8x128xf32>
    %245 = arith.mulf %244, %209 : vector<8x128xf32>
    %cst_119 = arith.constant 1.000000e+00 : f32
    %246 = vector.broadcast %cst_119 : f32 to vector<8x128xf32>
    %247 = arith.addf %246, %243 : vector<8x128xf32>
    %248 = arith.mulf %245, %247 : vector<8x128xf32>
    %249 = arith.truncf %248 : vector<8x128xf32> to vector<8x128xbf16>
    %c0_120 = arith.constant 0 : index
    %c0_121 = arith.constant 0 : index
    %c0_122 = arith.constant 0 : index
    %250 = vector.load %arg10[%c0_120, %c0_121, %c0_122] : memref<3x128x128xbf16, #tpu.memory_space<vmem>>, vector<1x128x128xbf16>
    %251 = vector.shape_cast %250 : vector<1x128x128xbf16> to vector<128x128xbf16>
    %cst_123 = arith.constant dense<0.000000e+00> : vector<8x128xf32>
    %252 = tpu.matmul %249, %251, %cst_123 {dimension_numbers = #tpu.dot_dimension_numbers<[1], [0], [0], [1], [0, 0, 1, 1], [], []>} : vector<8x128xbf16>, vector<128x128xbf16>, vector<8x128xf32> -> vector<8x128xf32>
    %c0_124 = arith.constant 0 : index
    %c0_125 = arith.constant 0 : index
    %c0_126 = arith.constant 0 : index
    %253 = vector.load %arg11[%c0_124, %c0_125, %c0_126] : memref<3x1x128xf32, #tpu.memory_space<vmem>>, vector<1x1x128xf32>
    %254 = vector.shape_cast %253 : vector<1x1x128xf32> to vector<1x128xf32>
    %255 = vector.broadcast %254 : vector<1x128xf32> to vector<8x128xf32>
    %256 = arith.addf %252, %255 : vector<8x128xf32>
    %257 = arith.truncf %256 : vector<8x128xf32> to vector<8x128xbf16>
    %c1_127 = arith.constant 1 : index
    %c0_128 = arith.constant 0 : index
    %c0_129 = arith.constant 0 : index
    %258 = vector.load %arg8[%c1_127, %c0_128, %c0_129] : memref<3x128x128xbf16, #tpu.memory_space<vmem>>, vector<1x128x128xbf16>
    %259 = vector.shape_cast %258 : vector<1x128x128xbf16> to vector<128x128xbf16>
    %cst_130 = arith.constant dense<0.000000e+00> : vector<8x128xf32>
    %260 = tpu.matmul %257, %259, %cst_130 {dimension_numbers = #tpu.dot_dimension_numbers<[1], [0], [0], [1], [0, 0, 1, 1], [], []>} : vector<8x128xbf16>, vector<128x128xbf16>, vector<8x128xf32> -> vector<8x128xf32>
    %c1_131 = arith.constant 1 : index
    %c0_132 = arith.constant 0 : index
    %c0_133 = arith.constant 0 : index
    %261 = vector.load %arg9[%c1_131, %c0_132, %c0_133] : memref<3x1x128xf32, #tpu.memory_space<vmem>>, vector<1x1x128xf32>
    %262 = vector.shape_cast %261 : vector<1x1x128xf32> to vector<1x128xf32>
    %263 = vector.broadcast %262 : vector<1x128xf32> to vector<8x128xf32>
    %264 = arith.addf %260, %263 : vector<8x128xf32>
    %cst_134 = arith.constant 0.707106769 : f32
    %265 = vector.broadcast %cst_134 : f32 to vector<8x128xf32>
    %266 = arith.mulf %264, %265 : vector<8x128xf32>
    %267 = math.absf %266 : vector<8x128xf32>
    %cst_135 = arith.constant 0.327591091 : f32
    %268 = vector.broadcast %cst_135 : f32 to vector<8x128xf32>
    %269 = arith.mulf %268, %267 : vector<8x128xf32>
    %cst_136 = arith.constant 1.000000e+00 : f32
    %270 = vector.broadcast %cst_136 : f32 to vector<8x128xf32>
    %271 = arith.addf %270, %269 : vector<8x128xf32>
    %272 = tpu.reciprocal %271 {approx = true} : vector<8x128xf32> -> vector<8x128xf32>
    %cst_137 = arith.constant 1.06140542 : f32
    %273 = vector.broadcast %cst_137 : f32 to vector<8x128xf32>
    %274 = arith.mulf %273, %272 : vector<8x128xf32>
    %cst_138 = arith.constant -1.45315206 : f32
    %275 = vector.broadcast %cst_138 : f32 to vector<8x128xf32>
    %276 = arith.addf %274, %275 : vector<8x128xf32>
    %277 = arith.mulf %276, %272 : vector<8x128xf32>
    %cst_139 = arith.constant 1.42141378 : f32
    %278 = vector.broadcast %cst_139 : f32 to vector<8x128xf32>
    %279 = arith.addf %277, %278 : vector<8x128xf32>
    %280 = arith.mulf %279, %272 : vector<8x128xf32>
    %cst_140 = arith.constant -0.284496725 : f32
    %281 = vector.broadcast %cst_140 : f32 to vector<8x128xf32>
    %282 = arith.addf %280, %281 : vector<8x128xf32>
    %283 = arith.mulf %282, %272 : vector<8x128xf32>
    %cst_141 = arith.constant 0.254829586 : f32
    %284 = vector.broadcast %cst_141 : f32 to vector<8x128xf32>
    %285 = arith.addf %283, %284 : vector<8x128xf32>
    %286 = arith.mulf %285, %272 : vector<8x128xf32>
    %cst_142 = arith.constant 0.000000e+00 : f32
    %287 = vector.broadcast %cst_142 : f32 to vector<8x128xf32>
    %288 = arith.subf %287, %267 : vector<8x128xf32>
    %289 = arith.mulf %288, %267 : vector<8x128xf32>
    %290 = math.exp %289 : vector<8x128xf32>
    %291 = arith.mulf %286, %290 : vector<8x128xf32>
    %cst_143 = arith.constant 1.000000e+00 : f32
    %292 = vector.broadcast %cst_143 : f32 to vector<8x128xf32>
    %293 = arith.subf %292, %291 : vector<8x128xf32>
    %cst_144 = arith.constant 0.000000e+00 : f32
    %294 = vector.broadcast %cst_144 : f32 to vector<8x128xf32>
    %295 = arith.cmpf olt, %266, %294 : vector<8x128xf32>
    %cst_145 = arith.constant 0.000000e+00 : f32
    %296 = vector.broadcast %cst_145 : f32 to vector<8x128xf32>
    %297 = arith.subf %296, %293 : vector<8x128xf32>
    %298 = arith.select %295, %297, %293 : vector<8x128xi1>, vector<8x128xf32>
    %cst_146 = arith.constant 5.000000e-01 : f32
    %299 = vector.broadcast %cst_146 : f32 to vector<8x128xf32>
    %300 = arith.mulf %299, %264 : vector<8x128xf32>
    %cst_147 = arith.constant 1.000000e+00 : f32
    %301 = vector.broadcast %cst_147 : f32 to vector<8x128xf32>
    %302 = arith.addf %301, %298 : vector<8x128xf32>
    %303 = arith.mulf %300, %302 : vector<8x128xf32>
    %304 = arith.truncf %303 : vector<8x128xf32> to vector<8x128xbf16>
    %c1_148 = arith.constant 1 : index
    %c0_149 = arith.constant 0 : index
    %c0_150 = arith.constant 0 : index
    %305 = vector.load %arg10[%c1_148, %c0_149, %c0_150] : memref<3x128x128xbf16, #tpu.memory_space<vmem>>, vector<1x128x128xbf16>
    %306 = vector.shape_cast %305 : vector<1x128x128xbf16> to vector<128x128xbf16>
    %cst_151 = arith.constant dense<0.000000e+00> : vector<8x128xf32>
    %307 = tpu.matmul %304, %306, %cst_151 {dimension_numbers = #tpu.dot_dimension_numbers<[1], [0], [0], [1], [0, 0, 1, 1], [], []>} : vector<8x128xbf16>, vector<128x128xbf16>, vector<8x128xf32> -> vector<8x128xf32>
    %c1_152 = arith.constant 1 : index
    %c0_153 = arith.constant 0 : index
    %c0_154 = arith.constant 0 : index
    %308 = vector.load %arg11[%c1_152, %c0_153, %c0_154] : memref<3x1x128xf32, #tpu.memory_space<vmem>>, vector<1x1x128xf32>
    %309 = vector.shape_cast %308 : vector<1x1x128xf32> to vector<1x128xf32>
    %310 = vector.broadcast %309 : vector<1x128xf32> to vector<8x128xf32>
    %311 = arith.addf %307, %310 : vector<8x128xf32>
    %312 = arith.addf %311, %256 : vector<8x128xf32>
    %313 = arith.truncf %312 : vector<8x128xf32> to vector<8x128xbf16>
    %c2_155 = arith.constant 2 : index
    %c0_156 = arith.constant 0 : index
    %c0_157 = arith.constant 0 : index
    %314 = vector.load %arg8[%c2_155, %c0_156, %c0_157] : memref<3x128x128xbf16, #tpu.memory_space<vmem>>, vector<1x128x128xbf16>
    %315 = vector.shape_cast %314 : vector<1x128x128xbf16> to vector<128x128xbf16>
    %cst_158 = arith.constant dense<0.000000e+00> : vector<8x128xf32>
    %316 = tpu.matmul %313, %315, %cst_158 {dimension_numbers = #tpu.dot_dimension_numbers<[1], [0], [0], [1], [0, 0, 1, 1], [], []>} : vector<8x128xbf16>, vector<128x128xbf16>, vector<8x128xf32> -> vector<8x128xf32>
    %c2_159 = arith.constant 2 : index
    %c0_160 = arith.constant 0 : index
    %c0_161 = arith.constant 0 : index
    %317 = vector.load %arg9[%c2_159, %c0_160, %c0_161] : memref<3x1x128xf32, #tpu.memory_space<vmem>>, vector<1x1x128xf32>
    %318 = vector.shape_cast %317 : vector<1x1x128xf32> to vector<1x128xf32>
    %319 = vector.broadcast %318 : vector<1x128xf32> to vector<8x128xf32>
    %320 = arith.addf %316, %319 : vector<8x128xf32>
    %cst_162 = arith.constant 0.707106769 : f32
    %321 = vector.broadcast %cst_162 : f32 to vector<8x128xf32>
    %322 = arith.mulf %320, %321 : vector<8x128xf32>
    %323 = math.absf %322 : vector<8x128xf32>
    %cst_163 = arith.constant 0.327591091 : f32
    %324 = vector.broadcast %cst_163 : f32 to vector<8x128xf32>
    %325 = arith.mulf %324, %323 : vector<8x128xf32>
    %cst_164 = arith.constant 1.000000e+00 : f32
    %326 = vector.broadcast %cst_164 : f32 to vector<8x128xf32>
    %327 = arith.addf %326, %325 : vector<8x128xf32>
    %328 = tpu.reciprocal %327 {approx = true} : vector<8x128xf32> -> vector<8x128xf32>
    %cst_165 = arith.constant 1.06140542 : f32
    %329 = vector.broadcast %cst_165 : f32 to vector<8x128xf32>
    %330 = arith.mulf %329, %328 : vector<8x128xf32>
    %cst_166 = arith.constant -1.45315206 : f32
    %331 = vector.broadcast %cst_166 : f32 to vector<8x128xf32>
    %332 = arith.addf %330, %331 : vector<8x128xf32>
    %333 = arith.mulf %332, %328 : vector<8x128xf32>
    %cst_167 = arith.constant 1.42141378 : f32
    %334 = vector.broadcast %cst_167 : f32 to vector<8x128xf32>
    %335 = arith.addf %333, %334 : vector<8x128xf32>
    %336 = arith.mulf %335, %328 : vector<8x128xf32>
    %cst_168 = arith.constant -0.284496725 : f32
    %337 = vector.broadcast %cst_168 : f32 to vector<8x128xf32>
    %338 = arith.addf %336, %337 : vector<8x128xf32>
    %339 = arith.mulf %338, %328 : vector<8x128xf32>
    %cst_169 = arith.constant 0.254829586 : f32
    %340 = vector.broadcast %cst_169 : f32 to vector<8x128xf32>
    %341 = arith.addf %339, %340 : vector<8x128xf32>
    %342 = arith.mulf %341, %328 : vector<8x128xf32>
    %cst_170 = arith.constant 0.000000e+00 : f32
    %343 = vector.broadcast %cst_170 : f32 to vector<8x128xf32>
    %344 = arith.subf %343, %323 : vector<8x128xf32>
    %345 = arith.mulf %344, %323 : vector<8x128xf32>
    %346 = math.exp %345 : vector<8x128xf32>
    %347 = arith.mulf %342, %346 : vector<8x128xf32>
    %cst_171 = arith.constant 1.000000e+00 : f32
    %348 = vector.broadcast %cst_171 : f32 to vector<8x128xf32>
    %349 = arith.subf %348, %347 : vector<8x128xf32>
    %cst_172 = arith.constant 0.000000e+00 : f32
    %350 = vector.broadcast %cst_172 : f32 to vector<8x128xf32>
    %351 = arith.cmpf olt, %322, %350 : vector<8x128xf32>
    %cst_173 = arith.constant 0.000000e+00 : f32
    %352 = vector.broadcast %cst_173 : f32 to vector<8x128xf32>
    %353 = arith.subf %352, %349 : vector<8x128xf32>
    %354 = arith.select %351, %353, %349 : vector<8x128xi1>, vector<8x128xf32>
    %cst_174 = arith.constant 5.000000e-01 : f32
    %355 = vector.broadcast %cst_174 : f32 to vector<8x128xf32>
    %356 = arith.mulf %355, %320 : vector<8x128xf32>
    %cst_175 = arith.constant 1.000000e+00 : f32
    %357 = vector.broadcast %cst_175 : f32 to vector<8x128xf32>
    %358 = arith.addf %357, %354 : vector<8x128xf32>
    %359 = arith.mulf %356, %358 : vector<8x128xf32>
    %360 = arith.truncf %359 : vector<8x128xf32> to vector<8x128xbf16>
    %c2_176 = arith.constant 2 : index
    %c0_177 = arith.constant 0 : index
    %c0_178 = arith.constant 0 : index
    %361 = vector.load %arg10[%c2_176, %c0_177, %c0_178] : memref<3x128x128xbf16, #tpu.memory_space<vmem>>, vector<1x128x128xbf16>
    %362 = vector.shape_cast %361 : vector<1x128x128xbf16> to vector<128x128xbf16>
    %cst_179 = arith.constant dense<0.000000e+00> : vector<8x128xf32>
    %363 = tpu.matmul %360, %362, %cst_179 {dimension_numbers = #tpu.dot_dimension_numbers<[1], [0], [0], [1], [0, 0, 1, 1], [], []>} : vector<8x128xbf16>, vector<128x128xbf16>, vector<8x128xf32> -> vector<8x128xf32>
    %c2_180 = arith.constant 2 : index
    %c0_181 = arith.constant 0 : index
    %c0_182 = arith.constant 0 : index
    %364 = vector.load %arg11[%c2_180, %c0_181, %c0_182] : memref<3x1x128xf32, #tpu.memory_space<vmem>>, vector<1x1x128xf32>
    %365 = vector.shape_cast %364 : vector<1x1x128xf32> to vector<1x128xf32>
    %366 = vector.broadcast %365 : vector<1x128xf32> to vector<8x128xf32>
    %367 = arith.addf %363, %366 : vector<8x128xf32>
    %c0_183 = arith.constant 0 : index
    %c0_184 = arith.constant 0 : index
    %368 = vector.load %arg13[%c0_183, %c0_184] : memref<8x128xf32, #tpu.memory_space<vmem>>, vector<8x128xf32>
    tpu.vector_store %arg13[%c0_183, %c0_184], %367 {strides = array<i32>} : memref<8x128xf32, #tpu.memory_space<vmem>>, vector<8x128xf32>,
    %369 = arith.truncf %367 : vector<8x128xf32> to vector<8x128xbf16>
    %c0_185 = arith.constant 0 : index
    %c0_186 = arith.constant 0 : index
    %370 = vector.load %arg12[%c0_185, %c0_186] : memref<128x256xbf16, #tpu.memory_space<vmem>>, vector<128x256xbf16>
    %cst_187 = arith.constant dense<0.000000e+00> : vector<8x256xf32>
    %371 = tpu.matmul %369, %370, %cst_187 {dimension_numbers = #tpu.dot_dimension_numbers<[1], [0], [0], [1], [0, 0, 1, 1], [], []>} : vector<8x128xbf16>, vector<128x256xbf16>, vector<8x256xf32> -> vector<8x256xf32>
    %c0_188 = arith.constant 0 : index
    %c0_189 = arith.constant 0 : index
    %372 = vector.load %arg14[%c0_188, %c0_189] : memref<8x256xf32, #tpu.memory_space<vmem>>, vector<8x256xf32>
    tpu.vector_store %arg14[%c0_188, %c0_189], %371 {strides = array<i32>} : memref<8x256xf32, #tpu.memory_space<vmem>>, vector<8x256xf32>,
    return
  }
}

</mosaic_0001>

<bundles_post_ra>
// kernel: custom-call
= control target key start
LH: loop header
LB: loop body
LE: loop exit
PB: predicated region body
PF: predicated region fallthrough
CT: control target
= control target key end

     0   :  { %vm10_vm0 = vcmask 1041408   ;;  %s64_s0 = inlined_call_operand.vmem [shape: f32[2,1,5,5], index: 0, kind: input, shape index: {}]   ;;  %s65_s1 = inlined_call_operand.vmem [shape: f32[2,1,5,5], index: 1, kind: input, shape index: {}]   ;;  %s66_s2 = inlined_call_operand.vmem [shape: c64[2,1,5,5], index: 2, kind: output, shape index: {}]  }
   0x1   :  { %v5_v0 = vld [vmem:[%s64_s0] sm:$0xff]  ;;  %v20_v1 = vld [vmem:[%s64_s0 + $0x8] sm:$0x3] }
   0x2   :  { %v12_v2 = vld [vmem:[%s65_s1] sm:$0xff]  ;;  %6 = vst [vmem:[%s66_s2] sm:$0xff] %v5_v0  ;;  %21 = vst.msk [vmem:[%s66_s2 + $0x8] sm:$0xff] %vm10_vm0, %v20_v1  ;;  %v23_v3 = vld [vmem:[%s65_s1 + $0x8] sm:$0x3] }
   0x3   :  { %22 = vst [vmem:[%s66_s2 + $0xa] sm:$0xff] %v12_v2  ;;  %24 = vst.msk [vmem:[%s66_s2 + $0x12] sm:$0xff] %vm10_vm0, %v23_v3 }

// kernel: dft_vae_forward.1
= control target key start
LH: loop header
LB: loop body
LE: loop exit
PB: predicated region body
PF: predicated region fallthrough
CT: control target
= control target key end

     0   :  { %21 = vsyncpa [#allocation3], 0  ;;  %s3494_s0 = inlined_call_operand.vmem [shape: bf16[8,256], index: 0, kind: input, shape index: {}]   ;;  %s3495_s1 = inlined_call_operand.hbm [shape: bf16[256,128], index: 1, kind: input, shape index: {}]   ;;  %s3496_s2 = inlined_call_operand.hbm [shape: bf16[3,128,128], index: 2, kind: input, shape index: {}]   ;;  %s3497_s3 = inlined_call_operand.vmem [shape: f32[3,1,128], index: 3, kind: input, shape index: {}]   ;;  %s3498_s4 = inlined_call_operand.hbm [shape: bf16[3,128,128], index: 4, kind: input, shape index: {}]   ;;  %s3499_s5 = inlined_call_operand.vmem [shape: f32[3,1,128], index: 5, kind: input, shape index: {}]   ;;  %s3500_s6 = inlined_call_operand.hbm [shape: f32[128,128], index: 6, kind: input, shape index: {}]   ;;  %s3501_s7 = inlined_call_operand.vmem [shape: f32[8,128], index: 7, kind: input, shape index: {}]   ;;  %s3502_s8 = inlined_call_operand.hbm [shape: bf16[3,128,128], index: 8, kind: input, shape index: {}]   ;;  %s3503_s9 = inlined_call_operand.vmem [shape: f32[3,1,128], index: 9, kind: input, shape index: {}]   ;;  %s3504_s10 = inlined_call_operand.hbm [shape: bf16[3,128,128], index: 10, kind: input, shape index: {}]   ;;  %s3505_s11 = inlined_call_operand.vmem [shape: f32[3,1,128], index: 11, kind: input, shape index: {}]   ;;  %s3506_s12 = inlined_call_operand.hbm [shape: bf16[128,256], index: 12, kind: input, shape index: {}]   ;;  %s3507_s13 = inlined_call_operand.vmem [shape: f32[8,128], index: 13, kind: output, shape index: {0}]   ;;  %s3508_s14 = inlined_call_operand.vmem [shape: f32[8,256], index: 14, kind: output, shape index: {1}]   ;;  %s3509_s15 = inlined_call_operand.hbm [shape: f32[1,1], index: 15, kind: output, shape index: {2}]  }
   0x1   :  { %22 = vsyncpa [#allocation6], 0 }
   0x2   :  { %23 = vsyncpa [#allocation9], 0 }
   0x3   :  { %24 = vsyncpa [#allocation12], 0 }
   0x4   :  { %25 = vsyncpa [#allocation4], 0  ;;  %s3077_s18 = smov [#allocation5]   ;;  %s3078_s20 = smov [#allocation8]  }
   0x5   :  { %s45_s19 = sshll.u32 %s3077_s18, 4  ;;  %s73_s21 = sshll.u32 %s3078_s20, 4  ;;  %s46_s19 = int_to_ptr.vmem [resolvable:$true] %s45_s19  ;;  %s3173_s21 = int_to_ptr.vmem [resolvable:$true] %s73_s21 }
   0x6   :  { %s2903_s24 = scalar_lea.hbm %s3496_s2, 3072 }
   0x7   :  { %p2904_p0 = scmp.ne.s32.totalorder %s3496_s2, %s2903_s24  ;;  %p2907_p1 = scmp.lt.u32.totalorder %s2903_s24, %s3496_s2 }
   0x9   :  { %p2909_p2 = pnand %p2907_p1, %p2904_p0 }
   0xb   :  { %2912 = shalt.err (!%p2909_p2)
}
   0xc   :  { %s2913_s29 = scalar_lea.vmem %s46_s19, 3072  ;;  %p2918_p4 = scmp.lt.s32.totalorder %s46_s19, %s46_s19 }
   0xd   :  { %p2914_p3 = scmp.ne.s32.totalorder %s46_s19, %s2913_s29  ;;  %p2919_p5 = scmp.lt.s32.totalorder %s2913_s29, %s2913_s29 }
   0xf   :  { %p2920_p6 = por %p2919_p5, %p2918_p4 }
  0x11   :  { %p2921_p7 = pnand %p2920_p6, %p2914_p3 }
  0x13   :  { %2924 = shalt.err (!%p2921_p7)
}
  0x14   :  { %s3510_s30 = smov 64   ;;  %s3512_s16 = smov 4  }
  0x15   :  { %51 = dma.hbm_to_vmem [thread:$0]  %s3496_s2, 3072, %s46_s19, [#allocation6], %s3510_s30, %s3510_s30, %s3512_s16  }
  0x16   :  { %s2925_s23 = scalar_lea.hbm %s3500_s6, 2048 }
  0x17   :  { %p2926_p8 = scmp.ne.s32.totalorder %s3500_s6, %s2925_s23  ;;  %p2929_p9 = scmp.lt.u32.totalorder %s2925_s23, %s3500_s6 }
  0x19   :  { %p2931_p10 = pnand %p2929_p9, %p2926_p8 }
  0x1b   :  { %2934 = shalt.err (!%p2931_p10)
}
  0x1c   :  { %s2935_s28 = scalar_lea.vmem %s3173_s21, 2048  ;;  %p2940_p12 = scmp.lt.s32.totalorder %s3173_s21, %s3173_s21 }
  0x1d   :  { %p2936_p11 = scmp.ne.s32.totalorder %s3173_s21, %s2935_s28  ;;  %p2941_p13 = scmp.lt.s32.totalorder %s2935_s28, %s2935_s28 }
  0x1f   :  { %p2942_p0 = por %p2941_p13, %p2940_p12 }
  0x21   :  { %p2943_p1 = pnand %p2942_p0, %p2936_p11 }
  0x23   :  { %2946 = shalt.err (!%p2943_p1)
}
  0x24   :  { %s3081_s2 = smov 128   ;;  %s3082_s19 = smov 8  }
  0x25   :  { %79 = dma.hbm_to_vmem [thread:$0]  %s3500_s6, 2048, %s3173_s21, [#allocation9], %s3081_s2, %s3081_s2, %s3082_s19  }
  0x26   :  { %s3083_s18 = smov [#allocation11]   ;;  %s3084_s22 = smov [#allocation2]  }
  0x27   :  { %s101_s20 = sshll.u32 %s3083_s18, 4  ;;  %s33_s23 = sshll.u32 %s3084_s22, 4  ;;  %s102_s20 = int_to_ptr.vmem [resolvable:$true] %s101_s20  ;;  %s3210_s23 = int_to_ptr.vmem [resolvable:$true] %s33_s23 }
  0x28   :  { %s2947_s26 = scalar_lea.hbm %s3504_s10, 3072 }
  0x29   :  { %p2948_p2 = scmp.ne.s32.totalorder %s3504_s10, %s2947_s26  ;;  %p2951_p3 = scmp.lt.u32.totalorder %s2947_s26, %s3504_s10 }
  0x2b   :  { %p2953_p4 = pnand %p2951_p3, %p2948_p2 }
  0x2d   :  { %2956 = shalt.err (!%p2953_p4)
}
  0x2e   :  { %s2957_s6 = scalar_lea.vmem %s102_s20, 3072  ;;  %p2962_p6 = scmp.lt.s32.totalorder %s102_s20, %s102_s20 }
  0x2f   :  { %p2958_p5 = scmp.ne.s32.totalorder %s102_s20, %s2957_s6  ;;  %p2963_p7 = scmp.lt.s32.totalorder %s2957_s6, %s2957_s6 }
  0x31   :  { %p2964_p8 = por %p2963_p7, %p2962_p6 }
  0x33   :  { %p2965_p9 = pnand %p2964_p8, %p2958_p5 }
  0x35   :  { %2968 = shalt.err (!%p2965_p9)
}
  0x36   :  { %s3514_s21 = smov 4   ;;  %s3515_s29 = smov 64  }
  0x37   :  { %107 = dma.hbm_to_vmem [thread:$0]  %s3504_s10, 3072, %s102_s20, [#allocation12], %s3515_s29, %s3515_s29, %s3514_s21  }
  0x38   :  { %s2969_s30 = scalar_lea.hbm %s3495_s1, 2048 }
  0x39   :  { %p2970_p10 = scmp.ne.s32.totalorder %s3495_s1, %s2969_s30  ;;  %p2973_p11 = scmp.lt.u32.totalorder %s2969_s30, %s3495_s1 }
  0x3b   :  { %p2975_p12 = pnand %p2973_p11, %p2970_p10 }
  0x3d   :  { %2978 = shalt.err (!%p2975_p12)
}
  0x3e   :  { %s2979_s28 = scalar_lea.vmem %s3210_s23, 2048  ;;  %p2984_p0 = scmp.lt.s32.totalorder %s3210_s23, %s3210_s23 }
  0x3f   :  { %p2980_p13 = scmp.ne.s32.totalorder %s3210_s23, %s2979_s28  ;;  %p2985_p1 = scmp.lt.s32.totalorder %s2979_s28, %s2979_s28 }
  0x41   :  { %p2986_p2 = por %p2985_p1, %p2984_p0 }
  0x43   :  { %p2987_p3 = pnand %p2986_p2, %p2980_p13 }
  0x45   :  { %2990 = shalt.err (!%p2987_p3)
}
  0x46   :  { %39 = dma.hbm_to_vmem [thread:$0]  %s3495_s1, 2048, %s3210_s23, [#allocation3], %s3515_s29, %s3515_s29, %s3514_s21  }
  0x47   :  { %s3085_s6 = smov [#allocation7]   ;;  %s3086_s18 = smov [#allocation10]  }
  0x48   :  { %s59_s17 = sshll.u32 %s3085_s6, 4  ;;  %s87_s22 = sshll.u32 %s3086_s18, 4  ;;  %s60_s17 = int_to_ptr.vmem [resolvable:$true] %s59_s17  ;;  %s3247_s22 = int_to_ptr.vmem [resolvable:$true] %s87_s22 }
  0x49   :  { %s2991_s16 = scalar_lea.hbm %s3498_s4, 3072 }
  0x4a   :  { %p2992_p4 = scmp.ne.s32.totalorder %s3498_s4, %s2991_s16  ;;  %p2995_p5 = scmp.lt.u32.totalorder %s2991_s16, %s3498_s4 }
  0x4c   :  { %p2997_p6 = pnand %p2995_p5, %p2992_p4 }
  0x4e   :  { %3000 = shalt.err (!%p2997_p6)
}
  0x4f   :  { %s3001_s1 = scalar_lea.vmem %s60_s17, 3072  ;;  %p3006_p8 = scmp.lt.s32.totalorder %s60_s17, %s60_s17 }
  0x50   :  { %p3002_p7 = scmp.ne.s32.totalorder %s60_s17, %s3001_s1  ;;  %p3007_p9 = scmp.lt.s32.totalorder %s3001_s1, %s3001_s1 }
  0x52   :  { %p3008_p10 = por %p3007_p9, %p3006_p8 }
  0x54   :  { %p3009_p11 = pnand %p3008_p10, %p3002_p7 }
  0x56   :  { %3012 = shalt.err (!%p3009_p11)
}
  0x57   :  { %65 = dma.hbm_to_vmem [thread:$0]  %s3498_s4, 3072, %s60_s17, [#allocation6], %s3515_s29, %s3515_s29, %s3514_s21  }
  0x58   :  { %s3013_s18 = scalar_lea.hbm %s3502_s8, 3072 }
  0x59   :  { %p3014_p12 = scmp.ne.s32.totalorder %s3502_s8, %s3013_s18  ;;  %p3017_p13 = scmp.lt.u32.totalorder %s3013_s18, %s3502_s8 }
  0x5b   :  { %p3019_p0 = pnand %p3017_p13, %p3014_p12 }
  0x5d   :  { %3022 = shalt.err (!%p3019_p0)
}
  0x5e   :  { %s3023_s26 = scalar_lea.vmem %s3247_s22, 3072  ;;  %p3028_p2 = scmp.lt.s32.totalorder %s3247_s22, %s3247_s22 }
  0x5f   :  { %p3024_p1 = scmp.ne.s32.totalorder %s3247_s22, %s3023_s26  ;;  %p3029_p3 = scmp.lt.s32.totalorder %s3023_s26, %s3023_s26 }
  0x61   :  { %p3030_p4 = por %p3029_p3, %p3028_p2 }
  0x63   :  { %p3031_p5 = pnand %p3030_p4, %p3024_p1 }
  0x65   :  { %3034 = shalt.err (!%p3031_p5)
}
  0x66   :  { %93 = dma.hbm_to_vmem [thread:$0]  %s3502_s8, 3072, %s3247_s22, [#allocation9], %s3515_s29, %s3515_s29, %s3514_s21  }
  0x67   :  { %s3087_s27 = smov [#allocation13]   ;;  %s3035_s10 = scalar_lea.hbm %s3506_s12, 2048 }
  0x68   :  { %s115_s28 = sshll.u32 %s3087_s27, 4  ;;  %p3036_p6 = scmp.ne.s32.totalorder %s3506_s12, %s3035_s10  ;;  %s116_s28 = int_to_ptr.vmem [resolvable:$true] %s115_s28 }
  0x69   :  { %p3039_p7 = scmp.lt.u32.totalorder %s3035_s10, %s3506_s12 }
  0x6b   :  { %p3041_p8 = pnand %p3039_p7, %p3036_p6 }
  0x6d   :  { %3044 = shalt.err (!%p3041_p8)
}
  0x6e   :  { %s3045_s30 = scalar_lea.vmem %s116_s28, 2048  ;;  %p3050_p10 = scmp.lt.s32.totalorder %s116_s28, %s116_s28 }
  0x6f   :  { %p3046_p9 = scmp.ne.s32.totalorder %s116_s28, %s3045_s30  ;;  %p3051_p11 = scmp.lt.s32.totalorder %s3045_s30, %s3045_s30 }
  0x71   :  { %p3052_p12 = por %p3051_p11, %p3050_p10 }
  0x73   :  { %p3053_p13 = pnand %p3052_p12, %p3046_p9 }
  0x75   :  { %3056 = shalt.err (!%p3053_p13)
}
  0x76   :  { %121 = dma.hbm_to_vmem [thread:$0]  %s3506_s12, 2048, %s116_s28, [#allocation12], %s3081_s2, %s3081_s2, %s3082_s19  }
  0x77   :  { %3067 = dma.done.wait [#allocation3], 2048  }
  0x78   :  { %3068 = vsyncadd [#allocation3], 4294965248 }
  0x79   :  { %3069 = dma.done.wait [#allocation6], 6144  }
  0x7a   :  { %3070 = vsyncadd [#allocation6], 4294961152 }
  0x7b   :  { %3071 = dma.done.wait [#allocation9], 5120  }
  0x7c   :  { %3072 = vsyncadd [#allocation9], 4294962176 }
  0x7d   :  { %3073 = dma.done.wait [#allocation12], 5120  }
  0x7e   :  { %3074 = vsyncadd [#allocation12], 4294962176  ;;  %v3088_v0 = vmov 0.0   ;;  %v2737_v1 = vld [vmem:[#allocation2 + $0x40] sm:$0xff]   ;;  %v2739_v3 = vld [vmem:[#allocation2 + $0x48] sm:$0xff]   ;;  %vm3089_vm0 = vmmov 0  }
  0x7f   :  { %2420 = vmatprep.subr.bf16.mxu1 %v3088_v0  ;;  %v2738_v2 = vld [vmem:[#allocation2] sm:$0xff]   ;;  %2273 = vmatprep.subr.bf16.mxu0 %v2737_v1  ;;  %v2740_v4 = vld [vmem:[#allocation2 + $0x8] sm:$0xff]   ;;  %v2741_v5 = vld [vmem:[#allocation2 + $0x50] sm:$0xff]   ;;  %s3057_s25 = scalar_lea.hbm %s3509_s15, 16 }
  0x80   :  { %2274 = vmatpush3.bf16.msra.mxu0 %v2738_v2  ;;  %v2742_v6 = vld [vmem:[#allocation2 + $0x10] sm:$0xff]   ;;  %v2743_v7 = vld [vmem:[#allocation2 + $0x58] sm:$0xff]   ;;  %v2745_v9 = vld [vmem:[#allocation2 + $0x60] sm:$0xff]   ;;  %2436 = vmatprep.mubr.msk.bf16.mxu1 %vm3089_vm0, %v3088_v0  ;;  %p3058_p0 = scmp.ne.s32.totalorder %s3509_s15, %s3057_s25  ;;  %p3061_p1 = scmp.lt.u32.totalorder %s3057_s25, %s3509_s15 }
  0x81   :  { %2275 = vmatprep.subr.bf16.mxu0 %v2739_v3  ;;  %v2744_v8 = vld [vmem:[#allocation2 + $0x18] sm:$0xff]   ;;  %v2746_v10 = vld [vmem:[#allocation2 + $0x20] sm:$0xff]   ;;  %v2747_v11 = vld [vmem:[#allocation2 + $0x68] sm:$0xff]  }
  0x82   :  { %v144_v12 = vld [vmem:[%s3494_s0] sm:$0xff]  ;;  %v2748_v15 = vld [vmem:[#allocation2 + $0x28] sm:$0xff]   ;;  %v2749_v16 = vld [vmem:[#allocation2 + $0x70] sm:$0xff]   ;;  %p3063_p2 = pnand %p3061_p1, %p3058_p0 }
  0x83   :  { %v2124_v13 = vcombine.high %v144_v12, %v144_v12  ;;  %v2755_v14 = vld [vmem:[#allocation5] sm:$0xff]   ;;  %v2756_v17 = vld [vmem:[#allocation5 + $0x8] sm:$0xff]   ;;  %v2750_v18 = vld [vmem:[#allocation2 + $0x30] sm:$0xff]   ;;  %v2123_v23 = vcombine.low %v144_v12, %v144_v12 }
  0x84   :  { %2276 = vmatpush3.bf16.msra.mxu0 %v2740_v4  ;;  %2421 = vmatpush3.bf16.msra.mxu1 %v2755_v14  ;;  %v2751_v19 = vld [vmem:[#allocation2 + $0x78] sm:$0xff]   ;;  %v2757_v20 = vld [vmem:[#allocation5 + $0x10] sm:$0xff]   ;;  %v2759_v24 = vld [vmem:[#allocation5 + $0x20] sm:$0xff]  }
  0x85   :  { %2277 = vmatprep.subr.bf16.mxu0 %v2741_v5  ;;  %312 = vmatprep.mubr.bf16.mxu0 %v2124_v13  ;;  %v2752_v21 = vld [vmem:[#allocation2 + $0x38] sm:$0xff]   ;;  %v2760_v25 = vld [vmem:[#allocation5 + $0x28] sm:$0xff]   ;;  %v2761_v26 = vld [vmem:[#allocation5 + $0x30] sm:$0xff]  }
  0x86   :  { %2422 = vmatprep.subr.bf16.mxu1 %v3088_v0  ;;  %v2758_v22 = vld [vmem:[#allocation5 + $0x18] sm:$0xff]   ;;  %v2763_v34 = vld [vmem:[#allocation7] sm:$0xff]   ;;  %v2764_v35 = vld [vmem:[#allocation7 + $0x8] sm:$0xff]  }
  0x87   :  { %v2762_v27 = vld [vmem:[#allocation5 + $0x38] sm:$0xff]   ;;  %v2765_v36 = vld [vmem:[#allocation7 + $0x10] sm:$0xff]   ;;  %v2767_v38 = vld [vmem:[#allocation7 + $0x20] sm:$0xff]  }
  0x88   :  { %2278 = vmatpush3.bf16.msra.mxu0 %v2742_v6  ;;  %2423 = vmatpush3.bf16.msra.mxu1 %v2756_v17  ;;  %v2766_v37 = vld [vmem:[#allocation7 + $0x18] sm:$0xff]   ;;  %v2768_v39 = vld [vmem:[#allocation7 + $0x28] sm:$0xff]   ;;  %v2769_v40 = vld [vmem:[#allocation7 + $0x30] sm:$0xff]  }
  0x89   :  { %2279 = vmatprep.subr.bf16.mxu0 %v2743_v7  ;;  %2424 = vmatprep.subr.bf16.mxu1 %v3088_v0  ;;  %v2770_v41 = vld [vmem:[#allocation7 + $0x38] sm:$0xff]   ;;  %v2771_v42 = vld [vmem:[#allocation5 + $0x40] sm:$0xff]   ;;  %v2772_v43 = vld [vmem:[#allocation5 + $0x48] sm:$0xff]  }
  0x8a   :  { %v2773_v44 = vld [vmem:[#allocation5 + $0x50] sm:$0xff]   ;;  %v2774_v45 = vld [vmem:[#allocation5 + $0x58] sm:$0xff]   ;;  %v2775_v46 = vld [vmem:[#allocation5 + $0x60] sm:$0xff]  }
  0x8b   :  { %v2776_v47 = vld [vmem:[#allocation5 + $0x68] sm:$0xff]   ;;  %v2777_v48 = vld [vmem:[#allocation5 + $0x70] sm:$0xff]   ;;  %v2141_v49 = vld [vmem:[%s3497_s3] ss:$0 sm:$0xff] }
  0x8c   :  { %2280 = vmatpush3.bf16.msra.mxu0 %v2744_v8  ;;  %2425 = vmatpush3.bf16.msra.mxu1 %v2757_v20 }
  0x8d   :  { %2281 = vmatprep.subr.bf16.mxu0 %v2745_v9  ;;  %2426 = vmatprep.subr.bf16.mxu1 %v3088_v0 }
  0x90   :  { %2282 = vmatpush3.bf16.msra.mxu0 %v2746_v10  ;;  %2427 = vmatpush3.bf16.msra.mxu1 %v2758_v22 }
  0x91   :  { %2283 = vmatprep.subr.bf16.mxu0 %v2747_v11  ;;  %2428 = vmatprep.subr.bf16.mxu1 %v3088_v0 }
  0x94   :  { %2284 = vmatpush3.bf16.msra.mxu0 %v2748_v15  ;;  %2429 = vmatpush3.bf16.msra.mxu1 %v2759_v24 }
  0x95   :  { %2285 = vmatprep.subr.bf16.mxu0 %v2749_v16  ;;  %2430 = vmatprep.subr.bf16.mxu1 %v3088_v0 }
  0x98   :  { %2286 = vmatpush3.bf16.msra.mxu0 %v2750_v18  ;;  %2431 = vmatpush3.bf16.msra.mxu1 %v2760_v25  ;;  %v2778_v18 = vld [vmem:[#allocation5 + $0x78] sm:$0xff]  }
  0x99   :  { %2287 = vmatprep.subr.bf16.mxu0 %v2751_v19  ;;  %2432 = vmatprep.subr.bf16.mxu1 %v3088_v0  ;;  %v2150_v19 = vld [vmem:[%s3499_s5] ss:$0 sm:$0xff] }
  0x9c   :  { %2288 = vmatpush3.bf16.msra.mxu0 %v2752_v21  ;;  %2433 = vmatpush3.bf16.msra.mxu1 %v2761_v26  ;;  %v2779_v26 = vld [vmem:[#allocation7 + $0x40] sm:$0xff]  }
  0x9d   :  { %2440 = vmatprep.subr.bf16.mxu0 %v3088_v0  ;;  %2434 = vmatprep.subr.bf16.mxu1 %v3088_v0 }
  0x9f   :  { %313 = vmatmul.mubr.bf16.vlgmr.msra.gmra.mrb[0].mxu0 %v2123_v23 }
  0xa0   :  { %2435 = vmatpush3.bf16.msra.mxu1 %v2762_v27  ;;  %2456 = vmatprep.mubr.msk.bf16.mxu0 %vm3089_vm0, %v3088_v0  ;;  %v2780_v27 = vld [vmem:[#allocation7 + $0x48] sm:$0xff]  }
  0xa1   :  { %2460 = vmatprep.subr.bf16.mxu1 %v3088_v0  ;;  %2441 = vmatpush3.bf16.msra.mxu0 %v2763_v34  ;;  %v2787_v34 = vld [vmem:[#allocation5 + $0x80] sm:$0xff]  }
  0xa2   :  { %2442 = vmatprep.subr.bf16.mxu0 %v3088_v0 }
  0xa5   :  { %2443 = vmatpush3.bf16.msra.mxu0 %v2764_v35  ;;  %v2788_v35 = vld [vmem:[#allocation5 + $0x88] sm:$0xff]  }
  0xa6   :  { %2444 = vmatprep.subr.bf16.mxu0 %v3088_v0 }
  0xa9   :  { %2445 = vmatpush3.bf16.msra.mxu0 %v2765_v36  ;;  %v2789_v36 = vld [vmem:[#allocation5 + $0x90] sm:$0xff]  }
  0xaa   :  { %2446 = vmatprep.subr.bf16.mxu0 %v3088_v0 }
  0xad   :  { %2447 = vmatpush3.bf16.msra.mxu0 %v2766_v37  ;;  %v2790_v37 = vld [vmem:[#allocation5 + $0x98] sm:$0xff]  }
  0xae   :  { %2448 = vmatprep.subr.bf16.mxu0 %v3088_v0 }
  0xb1   :  { %2449 = vmatpush3.bf16.msra.mxu0 %v2767_v38  ;;  %v2791_v38 = vld [vmem:[#allocation5 + $0xa0] sm:$0xff]  }
  0xb2   :  { %2450 = vmatprep.subr.bf16.mxu0 %v3088_v0 }
  0xb5   :  { %2451 = vmatpush3.bf16.msra.mxu0 %v2768_v39  ;;  %v2792_v39 = vld [vmem:[#allocation5 + $0xa8] sm:$0xff]  }
  0xb6   :  { %2452 = vmatprep.subr.bf16.mxu0 %v3088_v0 }
  0xb9   :  { %2453 = vmatpush3.bf16.msra.mxu0 %v2769_v40  ;;  %v2160_v40 = vld [vmem:[%s3497_s3 + $0x1] ss:$0 sm:$0xff] }
  0xba   :  { %2454 = vmatprep.subr.bf16.mxu0 %v3088_v0 }
  0xbd   :  { %2455 = vmatpush3.bf16.msra.mxu0 %v2770_v41 }
  0xbe   :  { %2480 = vmatprep.subr.bf16.mxu0 %v3088_v0 }
 0x172   :  { %v2289_v28 = vpop.f32.mrb[0].mxu0 }
 0x173   :  { %v2290_v29 = vpop.f32.mrb[1].mxu0 }
 0x174   :  { %v2291_v30 = vadd.f32 %v2290_v29, %v2289_v28  ;;  %v2292_v31 = vpop.f32.mrb[2].mxu0  ;;  %v2781_v28 = vld [vmem:[#allocation7 + $0x50] sm:$0xff]   ;;  %v2782_v29 = vld [vmem:[#allocation7 + $0x58] sm:$0xff]  }
 0x175   :  { %v2293_v32 = vpop.f32.mrb[3].mxu0  ;;  %v2784_v31 = vld [vmem:[#allocation7 + $0x68] sm:$0xff]  }
 0x176   :  { %v320_v33 = vpack.c.bf16 %v2291_v30, %v2291_v30  ;;  %v2783_v30 = vld [vmem:[#allocation7 + $0x60] sm:$0xff]   ;;  %v2785_v32 = vld [vmem:[#allocation7 + $0x70] sm:$0xff]  }
 0x178   :  { %2437 = vmatmul.mubr.bf16.vlgmr.msra.gmra.mrb[0].mxu1 %v320_v33  ;;  %v2786_v33 = vld [vmem:[#allocation7 + $0x78] sm:$0xff]  }
 0x179   :  { %2476 = vmatprep.mubr.msk.bf16.mxu1 %vm3089_vm0, %v3088_v0  ;;  %2461 = vmatpush3.bf16.msra.mxu1 %v2771_v42 }
 0x17a   :  { %2462 = vmatprep.subr.bf16.mxu1 %v3088_v0 }
 0x17d   :  { %2463 = vmatpush3.bf16.msra.mxu1 %v2772_v43 }
 0x17e   :  { %2464 = vmatprep.subr.bf16.mxu1 %v3088_v0 }
 0x181   :  { %2465 = vmatpush3.bf16.msra.mxu1 %v2773_v44 }
 0x182   :  { %2466 = vmatprep.subr.bf16.mxu1 %v3088_v0 }
 0x185   :  { %2467 = vmatpush3.bf16.msra.mxu1 %v2774_v45 }
 0x186   :  { %2468 = vmatprep.subr.bf16.mxu1 %v3088_v0 }
 0x189   :  { %2469 = vmatpush3.bf16.msra.mxu1 %v2775_v46 }
 0x18a   :  { %2470 = vmatprep.subr.bf16.mxu1 %v3088_v0 }
 0x18d   :  { %2471 = vmatpush3.bf16.msra.mxu1 %v2776_v47 }
 0x18e   :  { %2472 = vmatprep.subr.bf16.mxu1 %v3088_v0 }
 0x191   :  { %2473 = vmatpush3.bf16.msra.mxu1 %v2777_v48 }
 0x192   :  { %2474 = vmatprep.subr.bf16.mxu1 %v3088_v0 }
 0x195   :  { %2475 = vmatpush3.bf16.msra.mxu1 %v2778_v18 }
 0x196   :  { %2500 = vmatprep.subr.bf16.mxu1 %v3088_v0 }
 0x24b   :  { %v426_v50 = vpop.f32.mrb[0].mxu1 }
 0x24c   :  { %v427_v51 = vadd.f32 %v2141_v49, %v426_v50  ;;  %v2438_v52 = vpop.f32.mrb[1].mxu1 }
 0x24d   :  { %v429_v53 = vpop.f32.mrb[2].mxu1 }
 0x24e   :  { %v432_v54 = vmul.f32 0.70710677, %v427_v51  ;;  %v2439_v55 = vpop.f32.mrb[3].mxu1  ;;  %v455_v14 = vmul.f32 0.5, %v427_v51 }
 0x250   :  { %v433_v56 = vand.u32 2147483647, %v432_v54  ;;  %vm452_vm1 = vcmp.lt.f32.partialorder %v432_v54, 0.0 }
 0x252   :  { %v434_v57 = vmul.f32 0.3275911, %v433_v56  ;;  %v446_v59 = vsub.f32 0.0, %v433_v56 }
 0x254   :  { %v435_v58 = vadd.f32 1.0, %v434_v57  ;;  %v447_v61 = vmul.f32 %v446_v59, %v433_v56 }
 0x256   :  { %2875 = vrcp.f32 %v435_v58  ;;  %v448_v1 = vmul.f32 1.442695, %v447_v61 }
 0x258   :  { %2877 = vpow2.f32 %v448_v1 }
 0x260   :  { %v2876_v60 = vpop.eup %2875 }
 0x261   :  { %v437_v62 = vmul.f32 1.0614054, %v2876_v60 }
 0x262   :  { %v2878_v9 = vpop.eup %2877 }
 0x263   :  { %v438_v63 = vadd.f32 -1.4531521, %v437_v62 }
 0x265   :  { %v439_v2 = vmul.f32 %v2876_v60, %v438_v63 }
 0x267   :  { %v440_v3 = vadd.f32 1.4214138, %v439_v2 }
 0x269   :  { %v441_v4 = vmul.f32 %v2876_v60, %v440_v3 }
 0x26b   :  { %v442_v5 = vadd.f32 -0.28449672, %v441_v4 }
 0x26d   :  { %v443_v6 = vmul.f32 %v2876_v60, %v442_v5 }
 0x26f   :  { %v444_v7 = vadd.f32 0.2548296, %v443_v6 }
 0x271   :  { %v445_v8 = vmul.f32 %v2876_v60, %v444_v7 }
 0x273   :  { %v450_v10 = vmul.f32 %v2878_v9, %v445_v8  ;;  %v2793_v9 = vld [vmem:[#allocation5 + $0xb0] sm:$0xff]  }
 0x275   :  { %v451_v11 = vsub.f32 1.0, %v450_v10  ;;  %v2794_v10 = vld [vmem:[#allocation5 + $0xb8] sm:$0xff]  }
 0x277   :  { %v453_v12 = vsub.f32 0.0, %v451_v11 }
 0x279   :  { %v454_v13 = vsel %vm452_vm1, %v453_v12, %v451_v11  ;;  %v2170_v11 = vld [vmem:[%s3499_s5 + $0x1] ss:$0 sm:$0xff] }
 0x27a   :  { %v456_v15 = vadd.f32 1.0, %v454_v13 }
 0x27c   :  { %v457_v16 = vmul.f32 %v456_v15, %v455_v14 }
 0x27e   :  { %v458_v17 = vpack.c.bf16 %v457_v16, %v457_v16 }
 0x280   :  { %2457 = vmatmul.mubr.bf16.vlgmr.msra.gmra.mrb[4].mxu0 %v458_v17 }
 0x281   :  { %2496 = vmatprep.mubr.msk.bf16.mxu0 %vm3089_vm0, %v3088_v0  ;;  %2481 = vmatpush3.bf16.msra.mxu0 %v2779_v26  ;;  %v2802_v26 = vld [vmem:[#allocation7 + $0xb8] sm:$0xff]  }
 0x282   :  { %2482 = vmatprep.subr.bf16.mxu0 %v3088_v0 }
 0x285   :  { %2483 = vmatpush3.bf16.msra.mxu0 %v2780_v27  ;;  %v1085_v27 = vld [vmem:[#allocation8] sm:$0xff] }
 0x286   :  { %2484 = vmatprep.subr.bf16.mxu0 %v3088_v0 }
 0x289   :  { %2485 = vmatpush3.bf16.msra.mxu0 %v2781_v28  ;;  %v1086_v28 = vld [vmem:[#allocation8 + $0x8] sm:$0xff] }
 0x28a   :  { %2486 = vmatprep.subr.bf16.mxu0 %v3088_v0 }
 0x28d   :  { %2487 = vmatpush3.bf16.msra.mxu0 %v2782_v29  ;;  %v1087_v29 = vld [vmem:[#allocation8 + $0x10] sm:$0xff] }
 0x28e   :  { %2488 = vmatprep.subr.bf16.mxu0 %v3088_v0 }
 0x291   :  { %2489 = vmatpush3.bf16.msra.mxu0 %v2783_v30  ;;  %v3090_v30 = vmov 0.0|0.0  }
 0x292   :  { %2490 = vmatprep.subr.bf16.mxu0 %v3088_v0 }
 0x295   :  { %2491 = vmatpush3.bf16.msra.mxu0 %v2784_v31  ;;  %v2696_v31 = vpack.c.bf16 %v1086_v28, %v1085_v27 }
 0x296   :  { %2492 = vmatprep.subr.bf16.mxu0 %v3088_v0 }
 0x299   :  { %2493 = vmatpush3.bf16.msra.mxu0 %v2785_v32  ;;  %v1088_v32 = vld [vmem:[#allocation8 + $0x18] sm:$0xff] }
 0x29a   :  { %2494 = vmatprep.subr.bf16.mxu0 %v3088_v0 }
 0x29d   :  { %2495 = vmatpush3.bf16.msra.mxu0 %v2786_v33  ;;  %v2699_v33 = vpack.c.bf16 %v1088_v32, %v1087_v29  ;;  %v2808_v32 = vld [vmem:[#allocation10 + $0x28] sm:$0xff]  }
 0x29e   :  { %2520 = vmatprep.subr.bf16.mxu0 %v3088_v0 }
 0x353   :  { %v564_v20 = vpop.f32.mrb[4].mxu0 }
 0x354   :  { %v3342_v21 = vadd.f32 %v2150_v19, %v564_v20  ;;  %v2458_v22 = vpop.f32.mrb[5].mxu0  ;;  %v2795_v19 = vld [vmem:[#allocation7 + $0x80] sm:$0xff]   ;;  %v2796_v20 = vld [vmem:[#allocation7 + $0x88] sm:$0xff]  }
 0x355   :  { %v567_v23 = vpop.f32.mrb[6].mxu0  ;;  %v2797_v22 = vld [vmem:[#allocation7 + $0x90] sm:$0xff]  }
 0x356   :  { %v570_v24 = vpack.c.bf16 %v3342_v21, %v3342_v21  ;;  %v2459_v25 = vpop.f32.mrb[7].mxu0  ;;  %v2798_v23 = vld [vmem:[#allocation7 + $0x98] sm:$0xff]  }
 0x357   :  { %v2801_v25 = vld [vmem:[#allocation7 + $0xb0] sm:$0xff]  }
 0x358   :  { %2477 = vmatmul.mubr.bf16.vlgmr.msra.gmra.mrb[4].mxu1 %v570_v24  ;;  %v2800_v24 = vld [vmem:[#allocation7 + $0xa8] sm:$0xff]  }
 0x359   :  { %2516 = vmatprep.mubr.msk.bf16.mxu1 %vm3089_vm0, %v3088_v0  ;;  %2501 = vmatpush3.bf16.msra.mxu1 %v2787_v34  ;;  %v1089_v34 = vld [vmem:[#allocation8 + $0x20] sm:$0xff] }
 0x35a   :  { %2502 = vmatprep.subr.bf16.mxu1 %v3088_v0 }
 0x35d   :  { %2503 = vmatpush3.bf16.msra.mxu1 %v2788_v35  ;;  %v1090_v35 = vld [vmem:[#allocation8 + $0x28] sm:$0xff] }
 0x35e   :  { %2504 = vmatprep.subr.bf16.mxu1 %v3088_v0 }
 0x361   :  { %2505 = vmatpush3.bf16.msra.mxu1 %v2789_v36  ;;  %v2702_v36 = vpack.c.bf16 %v1090_v35, %v1089_v34  ;;  %v2810_v34 = vld [vmem:[#allocation10 + $0x38] sm:$0xff]  }
 0x362   :  { %2506 = vmatprep.subr.bf16.mxu1 %v3088_v0 }
 0x365   :  { %2507 = vmatpush3.bf16.msra.mxu1 %v2790_v37  ;;  %v1091_v37 = vld [vmem:[#allocation8 + $0x30] sm:$0xff] }
 0x366   :  { %2508 = vmatprep.subr.bf16.mxu1 %v3088_v0 }
 0x369   :  { %2509 = vmatpush3.bf16.msra.mxu1 %v2791_v38  ;;  %v1092_v38 = vld [vmem:[#allocation8 + $0x38] sm:$0xff] }
 0x36a   :  { %2510 = vmatprep.subr.bf16.mxu1 %v3088_v0 }
 0x36d   :  { %2511 = vmatpush3.bf16.msra.mxu1 %v2792_v39  ;;  %v2705_v39 = vpack.c.bf16 %v1092_v38, %v1091_v37 }
 0x36e   :  { %2512 = vmatprep.subr.bf16.mxu1 %v3088_v0 }
 0x371   :  { %2513 = vmatpush3.bf16.msra.mxu1 %v2793_v9 }
 0x372   :  { %2514 = vmatprep.subr.bf16.mxu1 %v3088_v0 }
 0x375   :  { %2515 = vmatpush3.bf16.msra.mxu1 %v2794_v10 }
 0x376   :  { %2695 = vmatprep.subr.bf16.mxu1 %v3090_v30 }
 0x42b   :  { %v678_v41 = vpop.f32.mrb[4].mxu1 }
 0x42c   :  { %v679_v42 = vadd.f32 %v2160_v40, %v678_v41  ;;  %v2478_v43 = vpop.f32.mrb[5].mxu1  ;;  %v1093_v40 = vld [vmem:[#allocation8 + $0x40] sm:$0xff]  ;;  %v1094_v41 = vld [vmem:[#allocation8 + $0x48] sm:$0xff] }
 0x42d   :  { %v681_v44 = vpop.f32.mrb[6].mxu1  ;;  %v1095_v43 = vld [vmem:[#allocation8 + $0x50] sm:$0xff] }
 0x42e   :  { %v684_v45 = vmul.f32 0.70710677, %v679_v42  ;;  %v2479_v46 = vpop.f32.mrb[7].mxu1  ;;  %v707_v5 = vmul.f32 0.5, %v679_v42  ;;  %v2708_v42 = vpack.c.bf16 %v1094_v41, %v1093_v40  ;;  %v1096_v44 = vld [vmem:[#allocation8 + $0x58] sm:$0xff] }
 0x42f   :  { %v1097_v46 = vld [vmem:[#allocation8 + $0x60] sm:$0xff] }
 0x430   :  { %v685_v47 = vand.u32 2147483647, %v684_v45  ;;  %vm704_vm2 = vcmp.lt.f32.partialorder %v684_v45, 0.0  ;;  %v2711_v45 = vpack.c.bf16 %v1096_v44, %v1095_v43 }
 0x432   :  { %v686_v48 = vmul.f32 0.3275911, %v685_v47  ;;  %v698_v50 = vsub.f32 0.0, %v685_v47 }
 0x434   :  { %v687_v49 = vadd.f32 1.0, %v686_v48  ;;  %v699_v52 = vmul.f32 %v698_v50, %v685_v47  ;;  %v1098_v47 = vld [vmem:[#allocation8 + $0x68] sm:$0xff] }
 0x435   :  { %v2714_v48 = vpack.c.bf16 %v1098_v47, %v1097_v46  ;;  %v1174_v46 = vld [vmem:[%s3501_s7] sm:$0xff] }
 0x436   :  { %2879 = vrcp.f32 %v687_v49  ;;  %v700_v55 = vmul.f32 1.442695, %v699_v52  ;;  %v2180_v49 = vld [vmem:[%s3497_s3 + $0x2] ss:$0 sm:$0xff] }
 0x438   :  { %2881 = vpow2.f32 %v700_v55 }
 0x440   :  { %v2880_v51 = vpop.eup %2879 }
 0x441   :  { %v689_v53 = vmul.f32 1.0614054, %v2880_v51 }
 0x442   :  { %v2882_v63 = vpop.eup %2881 }
 0x443   :  { %v690_v54 = vadd.f32 -1.4531521, %v689_v53 }
 0x445   :  { %v691_v56 = vmul.f32 %v2880_v51, %v690_v54 }
 0x447   :  { %v692_v57 = vadd.f32 1.4214138, %v691_v56 }
 0x449   :  { %v693_v58 = vmul.f32 %v2880_v51, %v692_v57 }
 0x44b   :  { %v694_v59 = vadd.f32 -0.28449672, %v693_v58 }
 0x44d   :  { %v695_v60 = vmul.f32 %v2880_v51, %v694_v59 }
 0x44f   :  { %v696_v61 = vadd.f32 0.2548296, %v695_v60 }
 0x451   :  { %v697_v62 = vmul.f32 %v2880_v51, %v696_v61 }
 0x453   :  { %v702_v1 = vmul.f32 %v2882_v63, %v697_v62 }
 0x455   :  { %v703_v2 = vsub.f32 1.0, %v702_v1 }
 0x457   :  { %v705_v3 = vsub.f32 0.0, %v703_v2 }
 0x459   :  { %v706_v4 = vsel %vm704_vm2, %v705_v3, %v703_v2 }
 0x45a   :  { %v708_v6 = vadd.f32 1.0, %v706_v4 }
 0x45c   :  { %v709_v7 = vmul.f32 %v708_v6, %v707_v5 }
 0x45e   :  { %v710_v8 = vpack.c.bf16 %v709_v7, %v709_v7 }
 0x460   :  { %2497 = vmatmul.mubr.bf16.vlgmr.msra.gmra.mrb[8].mxu0 %v710_v8 }
 0x461   :  { %2536 = vmatprep.mubr.msk.bf16.mxu0 %vm3089_vm0, %v3088_v0  ;;  %2521 = vmatpush3.bf16.msra.mxu0 %v2795_v19  ;;  %v1100_v19 = vld [vmem:[#allocation8 + $0x78] sm:$0xff] }
 0x462   :  { %2522 = vmatprep.subr.bf16.mxu0 %v3088_v0 }
 0x465   :  { %2523 = vmatpush3.bf16.msra.mxu0 %v2796_v20 }
 0x466   :  { %2524 = vmatprep.subr.bf16.mxu0 %v3088_v0 }
 0x469   :  { %2525 = vmatpush3.bf16.msra.mxu0 %v2797_v22  ;;  %v2803_v22 = vld [vmem:[#allocation10] sm:$0xff]  }
 0x46a   :  { %2526 = vmatprep.subr.bf16.mxu0 %v3088_v0 }
 0x46d   :  { %2527 = vmatpush3.bf16.msra.mxu0 %v2798_v23  ;;  %v2804_v23 = vld [vmem:[#allocation10 + $0x8] sm:$0xff]  }
 0x46e   :  { %2528 = vmatprep.subr.bf16.mxu0 %v3088_v0 }
 0x533   :  { %v818_v12 = vpop.f32.mrb[8].mxu0 }
 0x534   :  { %v819_v13 = vadd.f32 %v2170_v11, %v818_v12  ;;  %v2498_v14 = vpop.f32.mrb[9].mxu0 }
 0x535   :  { %v821_v15 = vpop.f32.mrb[10].mxu0 }
 0x536   :  { %v824_v16 = vadd.f32 %v819_v13, %v3342_v21  ;;  %v2499_v17 = vpop.f32.mrb[11].mxu0  ;;  %v2799_v21 = vld [vmem:[#allocation7 + $0xa0] sm:$0xff]  }
 0x537   :  { %2529 = vmatpush3.bf16.msra.mxu0 %v2799_v21  ;;  %v2805_v21 = vld [vmem:[#allocation10 + $0x10] sm:$0xff]  }
 0x538   :  { %v825_v18 = vpack.c.bf16 %v824_v16, %v824_v16  ;;  %2530 = vmatprep.subr.bf16.mxu0 %v3088_v0 }
 0x53a   :  { %2517 = vmatmul.mubr.bf16.vlgmr.msra.gmra.mrb[8].mxu1 %v825_v18  ;;  %v1099_v18 = vld [vmem:[#allocation8 + $0x70] sm:$0xff] }
 0x53b   :  { %2572 = vmatprep.mubr.msk.f32.mxu1 %vm3089_vm0, %v3088_v0  ;;  %2531 = vmatpush3.bf16.msra.mxu0 %v2800_v24  ;;  %v2717_v20 = vpack.c.bf16 %v1100_v19, %v1099_v18  ;;  %v2190_v24 = vld [vmem:[%s3499_s5 + $0x2] ss:$0 sm:$0xff] }
 0x53c   :  { %2532 = vmatprep.subr.bf16.mxu0 %v3088_v0  ;;  %2697 = vmatpush3.bf16.msra.mxu1 %v2696_v31  ;;  %v2807_v31 = vld [vmem:[#allocation10 + $0x20] sm:$0xff]  }
 0x53d   :  { %2698 = vmatprep.subr.bf16.mxu1 %v3090_v30 }
 0x53f   :  { %2533 = vmatpush3.bf16.msra.mxu0 %v2801_v25 }
 0x540   :  { %2534 = vmatprep.subr.bf16.mxu0 %v3088_v0  ;;  %2700 = vmatpush3.bf16.msra.mxu1 %v2699_v33  ;;  %v2809_v33 = vld [vmem:[#allocation10 + $0x30] sm:$0xff]  }
 0x541   :  { %2701 = vmatprep.subr.bf16.mxu1 %v3090_v30 }
 0x543   :  { %2535 = vmatpush3.bf16.msra.mxu0 %v2802_v26 }
 0x544   :  { %2575 = vmatprep.subr.bf16.mxu0 %v3088_v0  ;;  %2703 = vmatpush3.bf16.msra.mxu1 %v2702_v36  ;;  %v1079_v36 = vlaneseq }
 0x545   :  { %2704 = vmatprep.subr.bf16.mxu1 %v3090_v30 }
 0x546   :  { %v1080_v41 = vand.u32 127, %v1079_v36 }
 0x548   :  { %2706 = vmatpush3.bf16.msra.mxu1 %v2705_v39  ;;  %vm1083_vm4 = vcmp.lt.s32.totalorder %v1080_v41, 8 }
 0x549   :  { %2707 = vmatprep.subr.bf16.mxu1 %v3090_v30 }
 0x54c   :  { %2709 = vmatpush3.bf16.msra.mxu1 %v2708_v42  ;;  %v1082_v42 = vshrl.u32 %v1079_v36, 7 }
 0x54d   :  { %2710 = vmatprep.subr.bf16.mxu1 %v3090_v30 }
 0x54e   :  { %vm1177_vm5 = vcmp.lt.s32.totalorder %v1082_v42, 2 }
 0x54f   :  { %vm1178_vm6 = vmand %vm1083_vm4, %vm1177_vm5 }
 0x550   :  { %2712 = vmatpush3.bf16.msra.mxu1 %v2711_v45 }
 0x551   :  { %2713 = vmatprep.subr.bf16.mxu1 %v3090_v30 }
 0x554   :  { %2715 = vmatpush3.bf16.msra.mxu1 %v2714_v48 }
 0x555   :  { %2716 = vmatprep.subr.bf16.mxu1 %v3090_v30  ;;  %v2806_v30 = vld [vmem:[#allocation10 + $0x18] sm:$0xff]  }
 0x558   :  { %2718 = vmatpush3.bf16.msra.mxu1 %v2717_v20 }
 0x559   :  { %2595 = vmatprep.subr.bf16.mxu1 %v3088_v0 }
 0x60d   :  { %v933_v50 = vpop.f32.mrb[8].mxu1 }
 0x60e   :  { %v934_v51 = vadd.f32 %v2180_v49, %v933_v50  ;;  %v2518_v52 = vpop.f32.mrb[9].mxu1 }
 0x60f   :  { %v936_v53 = vpop.f32.mrb[10].mxu1 }
 0x610   :  { %v939_v54 = vmul.f32 0.70710677, %v934_v51  ;;  %v2519_v55 = vpop.f32.mrb[11].mxu1  ;;  %v962_v14 = vmul.f32 0.5, %v934_v51 }
 0x611   :  { %v2811_v55 = vld [vmem:[#allocation11] sm:$0xff]  }
 0x612   :  { %v940_v56 = vand.u32 2147483647, %v939_v54  ;;  %vm959_vm3 = vcmp.lt.f32.partialorder %v939_v54, 0.0 }
 0x614   :  { %v941_v57 = vmul.f32 0.3275911, %v940_v56  ;;  %v953_v59 = vsub.f32 0.0, %v940_v56 }
 0x616   :  { %v942_v58 = vadd.f32 1.0, %v941_v57  ;;  %v954_v61 = vmul.f32 %v953_v59, %v940_v56  ;;  %v2812_v56 = vld [vmem:[#allocation11 + $0x8] sm:$0xff]   ;;  %v2813_v57 = vld [vmem:[#allocation11 + $0x10] sm:$0xff]   ;;  %v2815_v59 = vld [vmem:[#allocation11 + $0x20] sm:$0xff]  }
 0x618   :  { %2883 = vrcp.f32 %v942_v58  ;;  %v955_v1 = vmul.f32 1.442695, %v954_v61  ;;  %v2814_v58 = vld [vmem:[#allocation11 + $0x18] sm:$0xff]   ;;  %v2817_v61 = vld [vmem:[#allocation11 + $0x30] sm:$0xff]  }
 0x61a   :  { %2885 = vpow2.f32 %v955_v1 }
 0x622   :  { %v2884_v60 = vpop.eup %2883 }
 0x623   :  { %v944_v62 = vmul.f32 1.0614054, %v2884_v60 }
 0x624   :  { %v2886_v9 = vpop.eup %2885 }
 0x625   :  { %v945_v63 = vadd.f32 -1.4531521, %v944_v62  ;;  %v2818_v62 = vld [vmem:[#allocation11 + $0x38] sm:$0xff]  }
 0x627   :  { %v946_v2 = vmul.f32 %v2884_v60, %v945_v63  ;;  %v2819_v63 = vld [vmem:[#allocation10 + $0x40] sm:$0xff]  }
 0x629   :  { %v947_v3 = vadd.f32 1.4214138, %v946_v2  ;;  %v2820_v2 = vld [vmem:[#allocation10 + $0x48] sm:$0xff]  }
 0x62b   :  { %v948_v4 = vmul.f32 %v2884_v60, %v947_v3 }
 0x62d   :  { %v949_v5 = vadd.f32 -0.28449672, %v948_v4 }
 0x62f   :  { %v950_v6 = vmul.f32 %v2884_v60, %v949_v5  ;;  %v2821_v5 = vld [vmem:[#allocation10 + $0x50] sm:$0xff]  }
 0x631   :  { %v951_v7 = vadd.f32 0.2548296, %v950_v6 }
 0x633   :  { %v952_v8 = vmul.f32 %v2884_v60, %v951_v7  ;;  %v2816_v60 = vld [vmem:[#allocation11 + $0x28] sm:$0xff]  }
 0x635   :  { %v957_v10 = vmul.f32 %v2886_v9, %v952_v8  ;;  %v2822_v8 = vld [vmem:[#allocation10 + $0x58] sm:$0xff]  }
 0x637   :  { %v958_v11 = vsub.f32 1.0, %v957_v10 }
 0x639   :  { %v960_v12 = vsub.f32 0.0, %v958_v11 }
 0x63b   :  { %v961_v13 = vsel %vm959_vm3, %v960_v12, %v958_v11  ;;  %v2823_v11 = vld [vmem:[#allocation10 + $0x60] sm:$0xff]   ;;  %v2824_v12 = vld [vmem:[#allocation10 + $0x68] sm:$0xff]  }
 0x63c   :  { %v963_v15 = vadd.f32 1.0, %v961_v13  ;;  %v2825_v13 = vld [vmem:[#allocation10 + $0x70] sm:$0xff]  }
 0x63e   :  { %v964_v16 = vmul.f32 %v963_v15, %v962_v14  ;;  %v2199_v14 = vld [vmem:[%s3503_s9] ss:$0 sm:$0xff] }
 0x640   :  { %v965_v17 = vpack.c.bf16 %v964_v16, %v964_v16 }
 0x642   :  { %2537 = vmatmul.mubr.bf16.vlgmr.msra.gmra.mrb[12].mxu0 %v965_v17 }
 0x643   :  { %2591 = vmatprep.mubr.msk.bf16.mxu0 %vm3089_vm0, %v3088_v0  ;;  %2576 = vmatpush3.bf16.msra.mxu0 %v2803_v22 }
 0x644   :  { %2577 = vmatprep.subr.bf16.mxu0 %v3088_v0 }
 0x647   :  { %2578 = vmatpush3.bf16.msra.mxu0 %v2804_v23 }
 0x648   :  { %2579 = vmatprep.subr.bf16.mxu0 %v3088_v0 }
 0x64b   :  { %2580 = vmatpush3.bf16.msra.mxu0 %v2805_v21 }
 0x64c   :  { %2581 = vmatprep.subr.bf16.mxu0 %v3088_v0 }
 0x64f   :  { %2582 = vmatpush3.bf16.msra.mxu0 %v2806_v30 }
 0x650   :  { %2583 = vmatprep.subr.bf16.mxu0 %v3088_v0 }
 0x653   :  { %2584 = vmatpush3.bf16.msra.mxu0 %v2807_v31 }
 0x654   :  { %2585 = vmatprep.subr.bf16.mxu0 %v3088_v0 }
 0x657   :  { %2586 = vmatpush3.bf16.msra.mxu0 %v2808_v32 }
 0x658   :  { %2587 = vmatprep.subr.bf16.mxu0 %v3088_v0 }
 0x65b   :  { %2588 = vmatpush3.bf16.msra.mxu0 %v2809_v33 }
 0x65c   :  { %2589 = vmatprep.subr.bf16.mxu0 %v3088_v0 }
 0x65f   :  { %2590 = vmatpush3.bf16.msra.mxu0 %v2810_v34 }
 0x660   :  { %2615 = vmatprep.subr.bf16.mxu0 %v3088_v0 }
 0x715   :  { %v1073_v25 = vpop.f32.mrb[12].mxu0 }
 0x716   :  { %v1074_v26 = vadd.f32 %v2190_v24, %v1073_v25  ;;  %v2538_v27 = vpop.f32.mrb[13].mxu0 }
 0x717   :  { %v1076_v28 = vpop.f32.mrb[14].mxu0 }
 0x718   :  { %v2539_v29 = vpop.f32.mrb[15].mxu0  ;;  %2573 = vmatmul.mubr.f32.vlgmr.msra.gmra.mrb[12].mxu1 %v1074_v26  ;;  %v1084_v43 = vsel %vm1083_vm4, %v1074_v26, 0.0 }
 0x719   :  { %2611 = vmatprep.mubr.msk.bf16.mxu1 %vm3089_vm0, %v3088_v0  ;;  %v1183_v48 = vmul.f32 %v1084_v43, %v1084_v43  ;;  %2596 = vmatpush3.bf16.msra.mxu1 %v2811_v55  ;;  %v2828_v55 = vld [vmem:[#allocation11 + $0x48] sm:$0xff]  }
 0x71a   :  { %2597 = vmatprep.subr.bf16.mxu1 %v3088_v0 }
 0x71d   :  { %2598 = vmatpush3.bf16.msra.mxu1 %v2812_v56  ;;  %v2829_v56 = vld [vmem:[#allocation11 + $0x50] sm:$0xff]  }
 0x71e   :  { %2599 = vmatprep.subr.bf16.mxu1 %v3088_v0 }
 0x721   :  { %2600 = vmatpush3.bf16.msra.mxu1 %v2813_v57  ;;  %v2830_v57 = vld [vmem:[#allocation11 + $0x58] sm:$0xff]  }
 0x722   :  { %2601 = vmatprep.subr.bf16.mxu1 %v3088_v0 }
 0x725   :  { %2602 = vmatpush3.bf16.msra.mxu1 %v2814_v58  ;;  %v2831_v58 = vld [vmem:[#allocation11 + $0x60] sm:$0xff]  }
 0x726   :  { %2603 = vmatprep.subr.bf16.mxu1 %v3088_v0 }
 0x729   :  { %2604 = vmatpush3.bf16.msra.mxu1 %v2815_v59  ;;  %v2832_v59 = vld [vmem:[#allocation11 + $0x68] sm:$0xff]  }
 0x72a   :  { %2605 = vmatprep.subr.bf16.mxu1 %v3088_v0 }
 0x72d   :  { %2606 = vmatpush3.bf16.msra.mxu1 %v2816_v60  ;;  %v2833_v60 = vld [vmem:[#allocation11 + $0x70] sm:$0xff]  }
 0x72e   :  { %2607 = vmatprep.subr.bf16.mxu1 %v3088_v0 }
 0x731   :  { %2608 = vmatpush3.bf16.msra.mxu1 %v2817_v61  ;;  %v2834_v61 = vld [vmem:[#allocation11 + $0x78] sm:$0xff]  }
 0x732   :  { %2609 = vmatprep.subr.bf16.mxu1 %v3088_v0 }
 0x735   :  { %2610 = vmatpush3.bf16.msra.mxu1 %v2818_v62  ;;  %v2835_v62 = vld [vmem:[#allocation10 + $0x80] sm:$0xff]  }
 0x736   :  { %2635 = vmatprep.subr.bf16.mxu1 %v3088_v0 }
 0x7eb   :  { %v1167_v35 = vpop.f32.mrb[12].mxu1 }
 0x7ec   :  { %v1171_v37 = vmul.f32 0.5, %v1167_v35  ;;  %v1180_v38 = vmul.f32 1.442695, %v1167_v35  ;;  %v2574_v39 = vpop.f32.mrb[13].mxu1  ;;  %v1179_v44 = vadd.f32 1.0, %v1167_v35 }
 0x7ee   :  { %v1172_v40 = vmul.f32 1.442695, %v1171_v37  ;;  %2887 = vpow2.f32 %v1180_v38 }
 0x7f0   :  { %2889 = vpow2.f32 %v1172_v40 }
 0x7f8   :  { %v2888_v45 = vpop.eup %2887 }
 0x7f9   :  { %v1182_v47 = vsub.f32 %v1179_v44, %v2888_v45 }
 0x7fa   :  { %v2890_v49 = vpop.eup %2889 }
 0x7fb   :  { %v1175_v50 = vmul.f32 %v2890_v49, %v1174_v46  ;;  %v1184_v51 = vsub.f32 %v1182_v47, %v1183_v48  ;;  %v2826_v46 = vld [vmem:[#allocation10 + $0x78] sm:$0xff]   ;;  %v2208_v47 = vld [vmem:[%s3505_s11] ss:$0 sm:$0xff] }
 0x7fd   :  { %v1176_v52 = vadd.f32 %v1175_v50, %v1084_v43  ;;  %v1185_v53 = vsel %vm1178_vm6, %v1184_v51, 0.0 }
 0x7fe   :  { %1186 = vadd.xlane.f32.xlu0 %v1185_v53 }
 0x7ff   :  { %v1198_v54 = vpack.c.bf16 %v1176_v52, %v1176_v52 }
 0x801   :  { %2592 = vmatmul.mubr.bf16.vlgmr.msra.gmra.mrb[16].mxu0 %v1198_v54  ;;  %v2827_v54 = vld [vmem:[#allocation11 + $0x40] sm:$0xff]  }
 0x802   :  { %2631 = vmatprep.mubr.msk.bf16.mxu0 %vm3089_vm0, %v3088_v0  ;;  %2616 = vmatpush3.bf16.msra.mxu0 %v2819_v63  ;;  %v2836_v63 = vld [vmem:[#allocation10 + $0x88] sm:$0xff]  }
 0x803   :  { %2617 = vmatprep.subr.bf16.mxu0 %v3088_v0 }
 0x806   :  { %2618 = vmatpush3.bf16.msra.mxu0 %v2820_v2  ;;  %v2838_v2 = vld [vmem:[#allocation10 + $0x98] sm:$0xff]  }
 0x807   :  { %2619 = vmatprep.subr.bf16.mxu0 %v3088_v0 }
 0x80a   :  { %2620 = vmatpush3.bf16.msra.mxu0 %v2821_v5  ;;  %v2218_v5 = vld [vmem:[%s3503_s9 + $0x1] ss:$0 sm:$0xff] }
 0x80b   :  { %2621 = vmatprep.subr.bf16.mxu0 %v3088_v0 }
 0x80e   :  { %2622 = vmatpush3.bf16.msra.mxu0 %v2822_v8 }
 0x80f   :  { %2623 = vmatprep.subr.bf16.mxu0 %v3088_v0 }
 0x812   :  { %2624 = vmatpush3.bf16.msra.mxu0 %v2823_v11 }
 0x813   :  { %2625 = vmatprep.subr.bf16.mxu0 %v3088_v0 }
 0x816   :  { %2626 = vmatpush3.bf16.msra.mxu0 %v2824_v12 }
 0x817   :  { %2627 = vmatprep.subr.bf16.mxu0 %v3088_v0 }
 0x81a   :  { %2628 = vmatpush3.bf16.msra.mxu0 %v2825_v13 }
 0x81b   :  { %2629 = vmatprep.subr.bf16.mxu0 %v3088_v0 }
 0x81e   :  { %2630 = vmatpush3.bf16.msra.mxu0 %v2826_v46 }
 0x81f   :  { %2655 = vmatprep.subr.bf16.mxu0 %v3088_v0 }
 0x88b   :  { %v1187_v1 = vpop.xlane.xlu0 %1186 }
 0x88c   :  { %v1188_v3 = vrot.slane %v1187_v1, 4 }
 0x88e   :  { %v1189_v4 = vadd.f32 %v1188_v3, %v1187_v1  ;;  %v2837_v1 = vld [vmem:[#allocation10 + $0x90] sm:$0xff]   ;;  %v2839_v3 = vld [vmem:[#allocation10 + $0xa0] sm:$0xff]  }
 0x890   :  { %v1190_v6 = vrot.slane %v1189_v4, 2 }
 0x892   :  { %v1191_v7 = vadd.f32 %v1190_v6, %v1189_v4  ;;  %v2840_v4 = vld [vmem:[#allocation10 + $0xa8] sm:$0xff]  }
 0x894   :  { %v1192_v9 = vrot.slane %v1191_v7, 1 }
 0x896   :  { %v1193_v10 = vadd.f32 %v1192_v9, %v1191_v7 }
 0x898   :  { %2719 = vpush %v1193_v10 }
 0x8c9   :  { %s2720_s7 = spop %2719 }
 0x8ca   :  { %s1195_s23 = smul.f32 -0.25, %s2720_s7 }
 0x8cc   :  { %1197 = sst [smem:[#allocation14]] %s1195_s23 }
 0x8d4   :  { %v1304_v15 = vpop.f32.mrb[16].mxu0 }
 0x8d5   :  { %v1305_v16 = vadd.f32 %v2199_v14, %v1304_v15  ;;  %v2593_v17 = vpop.f32.mrb[17].mxu0 }
 0x8d6   :  { %v1307_v18 = vpop.f32.mrb[18].mxu0 }
 0x8d7   :  { %v1310_v19 = vmul.f32 0.70710677, %v1305_v16  ;;  %v2594_v20 = vpop.f32.mrb[19].mxu0  ;;  %v1333_v42 = vmul.f32 0.5, %v1305_v16 }
 0x8d9   :  { %v1311_v22 = vand.u32 2147483647, %v1310_v19  ;;  %vm1330_vm7 = vcmp.lt.f32.partialorder %v1310_v19, 0.0 }
 0x8db   :  { %v1312_v23 = vmul.f32 0.3275911, %v1311_v22  ;;  %v1324_v24 = vsub.f32 0.0, %v1311_v22 }
 0x8dd   :  { %v1313_v21 = vadd.f32 1.0, %v1312_v23  ;;  %v1325_v26 = vmul.f32 %v1324_v24, %v1311_v22 }
 0x8df   :  { %2891 = vrcp.f32 %v1313_v21  ;;  %v1326_v29 = vmul.f32 1.442695, %v1325_v26 }
 0x8e1   :  { %2893 = vpow2.f32 %v1326_v29 }
 0x8e9   :  { %v2892_v25 = vpop.eup %2891 }
 0x8ea   :  { %v1315_v27 = vmul.f32 1.0614054, %v2892_v25 }
 0x8eb   :  { %v2894_v37 = vpop.eup %2893 }
 0x8ec   :  { %v1316_v28 = vadd.f32 -1.4531521, %v1315_v27 }
 0x8ee   :  { %v1317_v30 = vmul.f32 %v2892_v25, %v1316_v28 }
 0x8f0   :  { %v1318_v31 = vadd.f32 1.4214138, %v1317_v30 }
 0x8f2   :  { %v1319_v32 = vmul.f32 %v2892_v25, %v1318_v31 }
 0x8f4   :  { %v1320_v33 = vadd.f32 -0.28449672, %v1319_v32 }
 0x8f6   :  { %v1321_v34 = vmul.f32 %v2892_v25, %v1320_v33 }
 0x8f8   :  { %v1322_v35 = vadd.f32 0.2548296, %v1321_v34 }
 0x8fa   :  { %v1323_v36 = vmul.f32 %v2892_v25, %v1322_v35 }
 0x8fc   :  { %v1328_v38 = vmul.f32 %v2894_v37, %v1323_v36  ;;  %v2841_v37 = vld [vmem:[#allocation10 + $0xb0] sm:$0xff]  }
 0x8fe   :  { %v1329_v39 = vsub.f32 1.0, %v1328_v38  ;;  %v2842_v38 = vld [vmem:[#allocation10 + $0xb8] sm:$0xff]  }
 0x900   :  { %v1331_v40 = vsub.f32 0.0, %v1329_v39 }
 0x902   :  { %v1332_v41 = vsel %vm1330_vm7, %v1331_v40, %v1329_v39  ;;  %v2228_v39 = vld [vmem:[%s3505_s11 + $0x1] ss:$0 sm:$0xff] }
 0x903   :  { %v1334_v43 = vadd.f32 1.0, %v1332_v41 }
 0x905   :  { %v1335_v44 = vmul.f32 %v1334_v43, %v1333_v42 }
 0x907   :  { %v1336_v45 = vpack.c.bf16 %v1335_v44, %v1335_v44 }
 0x909   :  { %2612 = vmatmul.mubr.bf16.vlgmr.msra.gmra.mrb[16].mxu1 %v1336_v45 }
 0x90a   :  { %2651 = vmatprep.mubr.msk.bf16.mxu1 %vm3089_vm0, %v3088_v0  ;;  %2636 = vmatpush3.bf16.msra.mxu1 %v2827_v54  ;;  %v2850_v54 = vld [vmem:[#allocation11 + $0xb8] sm:$0xff]  }
 0x90b   :  { %2637 = vmatprep.subr.bf16.mxu1 %v3088_v0 }
 0x90e   :  { %2638 = vmatpush3.bf16.msra.mxu1 %v2828_v55  ;;  %v2851_v55 = vld [vmem:[#allocation13] ss:$8 sps:$4 sm:$0xff]  }
 0x90f   :  { %2639 = vmatprep.subr.bf16.mxu1 %v3088_v0 }
 0x912   :  { %2640 = vmatpush3.bf16.msra.mxu1 %v2829_v56  ;;  %v2853_v56 = vld [vmem:[#allocation13 + $0x4] ss:$8 sps:$4 sm:$0xff]  }
 0x913   :  { %2641 = vmatprep.subr.bf16.mxu1 %v3088_v0 }
 0x916   :  { %2642 = vmatpush3.bf16.msra.mxu1 %v2830_v57  ;;  %v2856_v57 = vld [vmem:[#allocation13 + $0x14] ss:$8 sps:$4 sm:$0xff]  }
 0x917   :  { %2643 = vmatprep.subr.bf16.mxu1 %v3088_v0 }
 0x91a   :  { %2644 = vmatpush3.bf16.msra.mxu1 %v2831_v58  ;;  %v2854_v58 = vld [vmem:[#allocation13 + $0x10] ss:$8 sps:$4 sm:$0xff]  }
 0x91b   :  { %2645 = vmatprep.subr.bf16.mxu1 %v3088_v0 }
 0x91e   :  { %2646 = vmatpush3.bf16.msra.mxu1 %v2832_v59  ;;  %v2859_v59 = vld [vmem:[#allocation13 + $0x24] ss:$8 sps:$4 sm:$0xff]  }
 0x91f   :  { %2647 = vmatprep.subr.bf16.mxu1 %v3088_v0 }
 0x922   :  { %2648 = vmatpush3.bf16.msra.mxu1 %v2833_v60  ;;  %v2857_v60 = vld [vmem:[#allocation13 + $0x20] ss:$8 sps:$4 sm:$0xff]  }
 0x923   :  { %2649 = vmatprep.subr.bf16.mxu1 %v3088_v0 }
 0x926   :  { %2650 = vmatpush3.bf16.msra.mxu1 %v2834_v61  ;;  %v2862_v61 = vld [vmem:[#allocation13 + $0x34] ss:$8 sps:$4 sm:$0xff]  }
 0x927   :  { %2675 = vmatprep.subr.bf16.mxu1 %v3088_v0 }
 0x9dc   :  { %v1442_v48 = vpop.f32.mrb[16].mxu1 }
 0x9dd   :  { %v3430_v49 = vadd.f32 %v2208_v47, %v1442_v48  ;;  %v2613_v50 = vpop.f32.mrb[17].mxu1  ;;  %v2843_v47 = vld [vmem:[#allocation11 + $0x80] sm:$0xff]   ;;  %v2844_v48 = vld [vmem:[#allocation11 + $0x88] sm:$0xff]  }
 0x9de   :  { %v1445_v51 = vpop.f32.mrb[18].mxu1  ;;  %v2845_v50 = vld [vmem:[#allocation11 + $0x90] sm:$0xff]  }
 0x9df   :  { %v1448_v52 = vpack.c.bf16 %v3430_v49, %v3430_v49  ;;  %v2614_v53 = vpop.f32.mrb[19].mxu1  ;;  %v2846_v51 = vld [vmem:[#allocation11 + $0x98] sm:$0xff]  }
 0x9e0   :  { %v2849_v53 = vld [vmem:[#allocation11 + $0xb0] sm:$0xff]  }
 0x9e1   :  { %2632 = vmatmul.mubr.bf16.vlgmr.msra.gmra.mrb[20].mxu0 %v1448_v52  ;;  %v2848_v52 = vld [vmem:[#allocation11 + $0xa8] sm:$0xff]  }
 0x9e2   :  { %2671 = vmatprep.mubr.msk.bf16.mxu0 %vm3089_vm0, %v3088_v0  ;;  %2656 = vmatpush3.bf16.msra.mxu0 %v2835_v62  ;;  %v2860_v62 = vld [vmem:[#allocation13 + $0x30] ss:$8 sps:$4 sm:$0xff]  }
 0x9e3   :  { %2657 = vmatprep.subr.bf16.mxu0 %v3088_v0 }
 0x9e6   :  { %2658 = vmatpush3.bf16.msra.mxu0 %v2836_v63  ;;  %v2865_v63 = vld [vmem:[#allocation13 + $0x44] ss:$8 sps:$4 sm:$0xff]  }
 0x9e7   :  { %2659 = vmatprep.subr.bf16.mxu0 %v3088_v0 }
 0x9ea   :  { %2660 = vmatpush3.bf16.msra.mxu0 %v2837_v1  ;;  %v2868_v1 = vld [vmem:[#allocation13 + $0x54] ss:$8 sps:$4 sm:$0xff]  }
 0x9eb   :  { %2661 = vmatprep.subr.bf16.mxu0 %v3088_v0 }
 0x9ee   :  { %2662 = vmatpush3.bf16.msra.mxu0 %v2838_v2  ;;  %v2866_v2 = vld [vmem:[#allocation13 + $0x50] ss:$8 sps:$4 sm:$0xff]  }
 0x9ef   :  { %2663 = vmatprep.subr.bf16.mxu0 %v3088_v0 }
 0x9f2   :  { %2664 = vmatpush3.bf16.msra.mxu0 %v2839_v3  ;;  %v2871_v3 = vld [vmem:[#allocation13 + $0x64] ss:$8 sps:$4 sm:$0xff]  }
 0x9f3   :  { %2665 = vmatprep.subr.bf16.mxu0 %v3088_v0 }
 0x9f6   :  { %2666 = vmatpush3.bf16.msra.mxu0 %v2840_v4  ;;  %v2869_v4 = vld [vmem:[#allocation13 + $0x60] ss:$8 sps:$4 sm:$0xff]  }
 0x9f7   :  { %2667 = vmatprep.subr.bf16.mxu0 %v3088_v0 }
 0x9fa   :  { %2668 = vmatpush3.bf16.msra.mxu0 %v2841_v37  ;;  %v2874_v37 = vld [vmem:[#allocation13 + $0x74] ss:$8 sps:$4 sm:$0xff]  }
 0x9fb   :  { %2669 = vmatprep.subr.bf16.mxu0 %v3088_v0 }
 0x9fe   :  { %2670 = vmatpush3.bf16.msra.mxu0 %v2842_v38  ;;  %v2872_v38 = vld [vmem:[#allocation13 + $0x70] ss:$8 sps:$4 sm:$0xff]  }
 0x9ff   :  { %2055 = vmatprep.subr.bf16.mxu0 %v2853_v56 }
 0xab4   :  { %v1556_v6 = vpop.f32.mrb[20].mxu0 }
 0xab5   :  { %v1557_v7 = vadd.f32 %v2218_v5, %v1556_v6  ;;  %v2633_v8 = vpop.f32.mrb[21].mxu0  ;;  %v2238_v5 = vld [vmem:[%s3503_s9 + $0x2] ss:$0 sm:$0xff] }
 0xab6   :  { %v1559_v9 = vpop.f32.mrb[22].mxu0 }
 0xab7   :  { %v1562_v10 = vmul.f32 0.70710677, %v1557_v7  ;;  %v2634_v11 = vpop.f32.mrb[23].mxu0  ;;  %v1585_v33 = vmul.f32 0.5, %v1557_v7 }
 0xab9   :  { %v1563_v12 = vand.u32 2147483647, %v1562_v10  ;;  %vm1582_vm8 = vcmp.lt.f32.partialorder %v1562_v10, 0.0 }
 0xabb   :  { %v1564_v13 = vmul.f32 0.3275911, %v1563_v12  ;;  %v1576_v15 = vsub.f32 0.0, %v1563_v12 }
 0xabd   :  { %v1565_v14 = vadd.f32 1.0, %v1564_v13  ;;  %v1577_v17 = vmul.f32 %v1576_v15, %v1563_v12 }
 0xabf   :  { %2895 = vrcp.f32 %v1565_v14  ;;  %v1578_v20 = vmul.f32 1.442695, %v1577_v17 }
 0xac1   :  { %2897 = vpow2.f32 %v1578_v20 }
 0xac9   :  { %v2896_v16 = vpop.eup %2895 }
 0xaca   :  { %v1567_v18 = vmul.f32 1.0614054, %v2896_v16 }
 0xacb   :  { %v2898_v28 = vpop.eup %2897 }
 0xacc   :  { %v1568_v19 = vadd.f32 -1.4531521, %v1567_v18 }
 0xace   :  { %v1569_v22 = vmul.f32 %v2896_v16, %v1568_v19 }
 0xad0   :  { %v1570_v23 = vadd.f32 1.4214138, %v1569_v22 }
 0xad2   :  { %v1571_v21 = vmul.f32 %v2896_v16, %v1570_v23 }
 0xad4   :  { %v1572_v24 = vadd.f32 -0.28449672, %v1571_v21 }
 0xad6   :  { %v1573_v25 = vmul.f32 %v2896_v16, %v1572_v24 }
 0xad8   :  { %v1574_v26 = vadd.f32 0.2548296, %v1573_v25 }
 0xada   :  { %v1575_v27 = vmul.f32 %v2896_v16, %v1574_v26 }
 0xadc   :  { %v1580_v29 = vmul.f32 %v2898_v28, %v1575_v27 }
 0xade   :  { %v1581_v30 = vsub.f32 1.0, %v1580_v29 }
 0xae0   :  { %v1583_v31 = vsub.f32 0.0, %v1581_v30 }
 0xae2   :  { %v1584_v32 = vsel %vm1582_vm8, %v1583_v31, %v1581_v30 }
 0xae3   :  { %v1586_v34 = vadd.f32 1.0, %v1584_v32 }
 0xae5   :  { %v1587_v35 = vmul.f32 %v1586_v34, %v1585_v33 }
 0xae7   :  { %v1588_v36 = vpack.c.bf16 %v1587_v35, %v1587_v35 }
 0xae9   :  { %2652 = vmatmul.mubr.bf16.vlgmr.msra.gmra.mrb[20].mxu1 %v1588_v36 }
 0xaea   :  { %2691 = vmatprep.mubr.msk.bf16.mxu1 %vm3089_vm0, %v3088_v0  ;;  %2676 = vmatpush3.bf16.msra.mxu1 %v2843_v47 }
 0xaeb   :  { %2677 = vmatprep.subr.bf16.mxu1 %v3088_v0 }
 0xaee   :  { %2678 = vmatpush3.bf16.msra.mxu1 %v2844_v48 }
 0xaef   :  { %2679 = vmatprep.subr.bf16.mxu1 %v3088_v0 }
 0xaf2   :  { %2680 = vmatpush3.bf16.msra.mxu1 %v2845_v50 }
 0xaf3   :  { %2681 = vmatprep.subr.bf16.mxu1 %v3088_v0 }
 0xaf6   :  { %2682 = vmatpush3.bf16.msra.mxu1 %v2846_v51 }
 0xaf7   :  { %2683 = vmatprep.subr.bf16.mxu1 %v3088_v0 }
 0xbbc   :  { %v1696_v40 = vpop.f32.mrb[20].mxu1 }
 0xbbd   :  { %v1697_v41 = vadd.f32 %v2228_v39, %v1696_v40  ;;  %v2653_v42 = vpop.f32.mrb[21].mxu1  ;;  %v3091_v39 = vmov 0   ;;  %v2248_v40 = vld [vmem:[%s3505_s11 + $0x2] ss:$0 sm:$0xff] }
 0xbbe   :  { %v1699_v43 = vpop.f32.mrb[22].mxu1 }
 0xbbf   :  { %v1702_v44 = vadd.f32 %v1697_v41, %v3430_v49  ;;  %v2654_v45 = vpop.f32.mrb[23].mxu1  ;;  %v2847_v49 = vld [vmem:[#allocation11 + $0xa0] sm:$0xff]  }
 0xbc0   :  { %2684 = vmatpush3.bf16.msra.mxu1 %v2847_v49 }
 0xbc1   :  { %v1703_v46 = vpack.c.bf16 %v1702_v44, %v1702_v44  ;;  %2685 = vmatprep.subr.bf16.mxu1 %v3088_v0 }
 0xbc3   :  { %2672 = vmatmul.mubr.bf16.vlgmr.msra.gmra.mrb[24].mxu0 %v1703_v46 }
 0xbc4   :  { %2686 = vmatpush3.bf16.msra.mxu1 %v2848_v52  ;;  %2056 = vmatpush1.bf16.msra.mxu0 %v2851_v55 }
 0xbc5   :  { %2687 = vmatprep.subr.bf16.mxu1 %v3088_v0  ;;  %2057 = vmatprep.subr.bf16.mxu0 %v2856_v57 }
 0xbc6   :  { %2087 = vmatprep.mubr.bf16.mxu0 %v3091_v39 }
 0xbc8   :  { %2688 = vmatpush3.bf16.msra.mxu1 %v2849_v53  ;;  %2058 = vmatpush1.bf16.msra.mxu0 %v2854_v58 }
 0xbc9   :  { %2689 = vmatprep.subr.bf16.mxu1 %v3088_v0  ;;  %2059 = vmatprep.subr.bf16.mxu0 %v2859_v59  ;;  %v2863_v0 = vld [vmem:[#allocation13 + $0x40] ss:$8 sps:$4 sm:$0xff]  }
 0xbcc   :  { %2690 = vmatpush3.bf16.msra.mxu1 %v2850_v54  ;;  %2060 = vmatpush1.bf16.msra.mxu0 %v2857_v60 }
 0xbcd   :  { %2061 = vmatprep.subr.bf16.mxu0 %v2862_v61 }
 0xbd0   :  { %2062 = vmatpush1.bf16.msra.mxu0 %v2860_v62 }
 0xbd1   :  { %2063 = vmatprep.subr.bf16.mxu0 %v2865_v63 }
 0xbd4   :  { %2064 = vmatpush1.bf16.msra.mxu0 %v2863_v0 }
 0xbd5   :  { %2065 = vmatprep.subr.bf16.mxu0 %v2868_v1 }
 0xbd8   :  { %2066 = vmatpush1.bf16.msra.mxu0 %v2866_v2 }
 0xbd9   :  { %2067 = vmatprep.subr.bf16.mxu0 %v2871_v3 }
 0xbdc   :  { %2068 = vmatpush1.bf16.msra.mxu0 %v2869_v4 }
 0xbdd   :  { %2069 = vmatprep.subr.bf16.mxu0 %v2874_v37 }
 0xbe0   :  { %2070 = vmatpush1.bf16.msra.mxu0 %v2872_v38 }
 0xc96   :  { %v1811_v6 = vpop.f32.mrb[24].mxu0 }
 0xc97   :  { %v1812_v7 = vadd.f32 %v2238_v5, %v1811_v6  ;;  %v2673_v8 = vpop.f32.mrb[25].mxu0 }
 0xc98   :  { %v1814_v9 = vpop.f32.mrb[26].mxu0 }
 0xc99   :  { %v1817_v10 = vmul.f32 0.70710677, %v1812_v7  ;;  %v2674_v11 = vpop.f32.mrb[27].mxu0  ;;  %v1840_v33 = vmul.f32 0.5, %v1812_v7 }
 0xc9b   :  { %v1818_v12 = vand.u32 2147483647, %v1817_v10  ;;  %vm1837_vm9 = vcmp.lt.f32.partialorder %v1817_v10, 0.0 }
 0xc9d   :  { %v1819_v13 = vmul.f32 0.3275911, %v1818_v12  ;;  %v1831_v15 = vsub.f32 0.0, %v1818_v12 }
 0xc9f   :  { %v1820_v14 = vadd.f32 1.0, %v1819_v13  ;;  %v1832_v17 = vmul.f32 %v1831_v15, %v1818_v12 }
 0xca1   :  { %2899 = vrcp.f32 %v1820_v14  ;;  %v1833_v20 = vmul.f32 1.442695, %v1832_v17 }
 0xca3   :  { %2901 = vpow2.f32 %v1833_v20 }
 0xcab   :  { %v2900_v16 = vpop.eup %2899 }
 0xcac   :  { %v1822_v18 = vmul.f32 1.0614054, %v2900_v16 }
 0xcad   :  { %v2902_v28 = vpop.eup %2901 }
 0xcae   :  { %v1823_v19 = vadd.f32 -1.4531521, %v1822_v18 }
 0xcb0   :  { %v1824_v22 = vmul.f32 %v2900_v16, %v1823_v19 }
 0xcb2   :  { %v1825_v23 = vadd.f32 1.4214138, %v1824_v22 }
 0xcb4   :  { %v1826_v21 = vmul.f32 %v2900_v16, %v1825_v23 }
 0xcb6   :  { %v1827_v24 = vadd.f32 -0.28449672, %v1826_v21 }
 0xcb8   :  { %v1828_v25 = vmul.f32 %v2900_v16, %v1827_v24 }
 0xcba   :  { %v1829_v26 = vadd.f32 0.2548296, %v1828_v25 }
 0xcbc   :  { %v1830_v27 = vmul.f32 %v2900_v16, %v1829_v26 }
 0xcbe   :  { %v1835_v29 = vmul.f32 %v2902_v28, %v1830_v27 }
 0xcc0   :  { %v1836_v30 = vsub.f32 1.0, %v1835_v29 }
 0xcc2   :  { %v1838_v31 = vsub.f32 0.0, %v1836_v30 }
 0xcc4   :  { %v1839_v32 = vsel %vm1837_vm9, %v1838_v31, %v1836_v30 }
 0xcc5   :  { %v1841_v34 = vadd.f32 1.0, %v1839_v32 }
 0xcc7   :  { %v1842_v35 = vmul.f32 %v1841_v34, %v1840_v33 }
 0xcc9   :  { %v1843_v36 = vpack.c.bf16 %v1842_v35, %v1842_v35 }
 0xccb   :  { %2692 = vmatmul.mubr.bf16.vlgmr.msra.gmra.mrb[24].mxu1 %v1843_v36 }
 0xd9e   :  { %v1951_v41 = vpop.f32.mrb[24].mxu1 }
 0xd9f   :  { %v1952_v42 = vadd.f32 %v2248_v40, %v1951_v41  ;;  %v2693_v43 = vpop.f32.mrb[25].mxu1 }
 0xda0   :  { %v1954_v44 = vpop.f32.mrb[26].mxu1 }
 0xda1   :  { %1957 = vst [vmem:[%s3507_s13] sm:$0xff] %v1952_v42  ;;  %v1958_v45 = vpack.c.bf16 %v1952_v42, %v1952_v42  ;;  %v2694_v46 = vpop.f32.mrb[27].mxu1 }
 0xda3   :  { %2088 = vmatmul.mubr.bf16.vlgmr.msra.gmra.mrb[28].mxu0 %v1958_v45 }
 0xda4   :  { %3066 = shalt.err (!%p3063_p2)
}
 0xda5   :  { %s3092_s27 = smov [#allocation14]  }
 0xda6   :  { %2109 = dma.smem_to_hbm %s3092_s27, 16, %s3509_s15, [#allocation4]  }
 0xe76   :  { %v2089_v47 = vpop.f32.mrb[28].mxu0 }
 0xe77   :  { %2096 = vst [vmem:[%s3508_s14] sm:$0xff] %v2089_v47  ;;  %v2091_v48 = vpop.f32.mrb[29].mxu0 }
 0xe78   :  { %2097 = vst [vmem:[%s3508_s14 + $0x8] sm:$0xff] %v2091_v48  ;;  %v2093_v50 = vpop.f32.mrb[30].mxu0 }
 0xe79   :  { %v2094_v51 = vpop.f32.mrb[31].mxu0 }
 0xe7a   :  { %3075 = dma.done.wait [#allocation4], 16  }
 0xe7b   :  { %3076 = vsyncadd [#allocation4], 4294967280 }
 0xe7c   :  { %2117 = sfence }
 0xe7d   :  { %2118 = vsyncpa [#allocation3], 1 }
 0xe7e   :  { %2119 = vsyncpa [#allocation6], 1 }
 0xe7f   :  { %2120 = vsyncpa [#allocation9], 1 }
 0xe80   :  { %2121 = vsyncpa [#allocation12], 1 }
 0xe81   :  { %2122 = vsyncpa [#allocation4], 1 }

</bundles_post_ra>
